<compile_context>
chip_gen: v5e
topology: v5e:2x2
jax: 0.10.0
libtpu: 0.0.40
codegen_flags: <defaults>
</compile_context>

<pallas_src>
import jax
import jax.numpy as jnp
from jax import lax
from jax.experimental import pallas as pl
from jax.experimental.pallas import tpu as pltpu


def relation_conv_kernel(w_ref, m_ref, x_ref, beta_ref, eps_ref,
                         o_ref, a_ref, r_ref):
    i = pl.program_id(0)
    j = pl.program_id(1)
    tm = a_ref.shape[0]

    # ---- alpha (masked segment softmax over the row slab): once per row tile.
    @pl.when(j == 0)
    def _():
        beta = beta_ref[0]
        eps = eps_ref[0]
        w = w_ref[...].astype(jnp.float32)            # [TM, N] edge weights
        m = m_ref[...].astype(jnp.float32)            # [TM, N] 0/1 mask (int8 in HBM)
        masked = m > 0.0

        # per-source-row L2 normalization of the co-occurrence weights.
        # (W is zero wherever M == 0 by construction -> no w*m pass needed.)
        inv_wnorm = lax.rsqrt(jnp.maximum(
            jnp.sum(w * w, axis=-1, keepdims=True), 1e-24))

        # masked softmax; the self loop (attr == 1 -> logit == beta) is folded
        # in algebraically instead of building an N x N identity.
        logits = (beta * inv_wnorm) * w
        row_max = jnp.maximum(
            jnp.max(jnp.where(masked, logits, -1e30), axis=-1, keepdims=True),
            beta)                                      # self-loop logit
        e = jnp.where(masked, jnp.exp(logits - row_max), 0.0)
        e_self = jnp.exp(beta - row_max)
        inv_denom = pl.reciprocal(
            jnp.sum(e, axis=-1, keepdims=True) + e_self + 1e-16, approx=True)

        a_ref[...] = (e * inv_denom).astype(a_ref.dtype)   # alpha in [0, 1]
        # residual row scale: (1 + eps) + alpha_self
        r_ref[...] = 1.0 + eps + e_self * inv_denom

    # ---- spmm over pre-normalized x: out = alpha @ xn  (bf16 MXU, f32 acc)
    acc = jnp.dot(a_ref[...], x_ref[...], preferred_element_type=jnp.float32)

    # ---- residual for the rows of this tile: (1 + eps + alpha_self) * xn_i
    row_start = pl.multiple_of(i * tm, tm)
    x_rows = x_ref[pl.ds(row_start, tm), :].astype(jnp.float32)
    o_ref[...] = (acc + r_ref[...] * x_rows).astype(o_ref.dtype)


def _round_up(v, m):
    return (v + m - 1) // m * m


def _vmem_budget_and_cap():
    """Generation-aware VMEM budget (per TensorCore) and compiler-limit cap."""
    try:
        info = pltpu.get_tpu_info()
        phys = getattr(info, "vmem_capacity_bytes", None)
        if phys is None:
            phys = getattr(info, "vmem_size_bytes", None)
        if phys is not None and int(phys) >= 100 * 1024 * 1024:
            # v5e / v6e: 128 MiB physical VMEM per TensorCore -> big tiles.
            return 96 * 1024 * 1024, 100 * 1024 * 1024
    except Exception:
        pass
    # v7x-class (64 MiB / TC) or unknown: conservative, leave Mosaic headroom.
    return 40 * 1024 * 1024, 50 * 1024 * 1024


def relation_conv(x, edge_index, edge_attr, *, eps=0.0, beta=1.0):
    """Dense-graph RelationConv forward. x: [N, F] f32, edge_index: [2, E] i32,
    edge_attr: [E] f32. Returns [N, F] f32. Assumes coalesced (no duplicate) edges."""
    x = x if x.ndim > 1 else x[:, None]
    x = x.astype(jnp.float32)
    n, f = x.shape

    budget, limit_cap = _vmem_budget_and_cap()

    # ---- lane-dense padding and tile selection ------------------------------
    n_pad = _round_up(max(n, 128), 128)
    f_pad = _round_up(max(f, 128), 128)

    # Prefer a single full-F feature tile so x is DMA'd once for the whole
    # kernel; otherwise pad F to 256 and tile at 256 (full MXU column width).
    if 2 * n_pad * f_pad * 2 <= budget // 3:
        tf = f_pad
    else:
        f_pad = _round_up(f_pad, 256)
        tf = 256

    def vmem_need(tm_, tf_, n_):
        w_bufs = 2 * tm_ * n_ * 2            # W row slab (bf16, double-buffered)
        m_bufs = 2 * tm_ * n_ * 1            # M row slab (int8, double-buffered)
        x_bufs = 2 * n_ * tf_ * 2            # x feature slab (bf16)
        out_bufs = 2 * tm_ * tf_ * 4         # f32 output tile
        scratch = tm_ * n_ * 2 + tm_ * 4     # alpha scratch (bf16) + row scale
        f32_tmp = 3 * tm_ * n_ * 4           # live f32 softmax temporaries
        return w_bufs + m_bufs + x_bufs + out_bufs + scratch + f32_tmp + (64 << 10)

    tm_cap = 1024 if budget > 64 * 1024 * 1024 else 512
    tm = 128
    for cand in (1024, 512, 256, 128):       # multiples of 128 only
        if cand <= tm_cap and cand <= n_pad and vmem_need(cand, tf, n_pad) <= budget:
            tm = cand
            break
    # keep >= 2 steps on the "parallel" i axis when possible (megacore / 2 TCs)
    while tm > 128 and n_pad // tm < 2:
        tm //= 2
    n_pad = _round_up(n_pad, tm)
    vmem_est = vmem_need(tm, tf, n_pad)
    # TODO(synk): for large sparse graphs, replace the dense NxN path with a
    # CSR formulation using PrefetchScalarGridSpec scalar prefetch; the O(N^2)
    # scatter below should also be hoisted out of the per-call path when the
    # graph is static.

    # ---- glue: remove self loops, scatter sparse graph into dense W / M ------
    row, col = edge_index[0], edge_index[1]
    keep = row != col
    Wp = jnp.zeros((n_pad, n_pad), jnp.bfloat16).at[row, col].set(
        jnp.where(keep, edge_attr.astype(jnp.float32), 0.0).astype(jnp.bfloat16))
    Mp = jnp.zeros((n_pad, n_pad), jnp.int8).at[row, col].max(
        keep.astype(jnp.int8))

    # padded + pre-L2-normalized features (padded rows stay exactly zero)
    Xp = jnp.zeros((n_pad, f_pad), jnp.float32).at[:n, :f].set(x)
    xn = Xp / jnp.maximum(
        jnp.sqrt(jnp.sum(Xp * Xp, axis=-1, keepdims=True)), 1e-12)
    Xn_bf = xn.astype(jnp.bfloat16)

    beta_arr = jnp.asarray([beta], jnp.float32)
    eps_arr = jnp.asarray([eps], jnp.float32)

    grid = (n_pad // tm, f_pad // tf)

    cost = pl.CostEstimate(
        flops=2 * n_pad * n_pad * f_pad + 8 * n_pad * n_pad,
        transcendentals=n_pad * n_pad,
        bytes_accessed=n_pad * n_pad * 3 + n_pad * f_pad * 2 + n_pad * f_pad * 4,
    )

    out = pl.pallas_call(
        relation_conv_kernel,
        out_shape=jax.ShapeDtypeStruct((n_pad, f_pad), jnp.float32),
        grid=grid,
        in_specs=[
            pl.BlockSpec((tm, n_pad), lambda i, j: (i, 0)),     # W row slab (bf16)
            pl.BlockSpec((tm, n_pad), lambda i, j: (i, 0)),     # M row slab (int8)
            pl.BlockSpec((n_pad, tf), lambda i, j: (0, j)),     # xn feature slab
            pl.BlockSpec(memory_space=pltpu.MemorySpace.SMEM),  # beta
            pl.BlockSpec(memory_space=pltpu.MemorySpace.SMEM),  # eps
        ],
        out_specs=pl.BlockSpec((tm, tf), lambda i, j: (i, j)),
        scratch_shapes=[
            pltpu.VMEM((tm, n_pad), jnp.bfloat16),   # alpha scratch
            pltpu.VMEM((tm, 1), jnp.float32),        # residual row scale
        ],
        compiler_params=pltpu.CompilerParams(
            dimension_semantics=("parallel", "arbitrary"),
            vmem_limit_bytes=int(max(32 * 1024 * 1024,
                                     min(vmem_est + 8 * 1024 * 1024,
                                         limit_cap))),
        ),
        cost_estimate=cost,
    )(Wp, Mp, Xn_bf, beta_arr, eps_arr)

    return out[:n, :f]


def relation_conv_reference(x, edge_index, edge_attr, *, eps=0.0, beta=1.0):
    """Pure-JAX f32 reference mirroring the PyTorch module."""
    x = x if x.ndim > 1 else x[:, None]
    n, _ = x.shape
    row, col = edge_index[0], edge_index[1]
    keep = row != col
    W = jnp.zeros((n, n), jnp.float32).at[row, col].set(
        jnp.where(keep, edge_attr.astype(jnp.float32), 0.0))
    M = jnp.zeros((n, n), jnp.float32).at[row, col].max(keep.astype(jnp.float32))
    wm = W * M
    norm = jnp.sqrt(jnp.sum(wm * wm, axis=1, keepdims=True))
    w_n = wm / jnp.maximum(norm, 1e-12)
    eye = jnp.eye(n, dtype=jnp.float32)
    w_n = w_n * (1.0 - eye) + eye
    m_full = jnp.maximum(M, eye)
    xn = x / jnp.maximum(jnp.sqrt(jnp.sum(x * x, axis=-1, keepdims=True)), 1e-12)
    logits = beta * w_n
    row_max = jnp.max(jnp.where(m_full > 0, logits, -jnp.inf), axis=1, keepdims=True)
    e = jnp.where(m_full > 0, jnp.exp(logits - row_max), 0.0)
    alpha = e / (jnp.sum(e, axis=1, keepdims=True) + 1e-16)
    return (1.0 + eps) * xn + alpha @ xn


if __name__ == "__main__":
    key = jax.random.PRNGKey(0)
    N, F = 48, 80   # small, non-multiples of 128 to exercise padding + slicing

    k_x, k_adj, k_attr = jax.random.split(key, 3)
    x = jax.random.normal(k_x, (N, F), jnp.float32)

    # deterministic sparse graph (may include self loops; kernel path removes them)
    adj_mask = jax.random.bernoulli(k_adj, p=0.25, shape=(N, N))
    rows, cols = jnp.nonzero(adj_mask)
    edge_index = jnp.stack([rows, cols]).astype(jnp.int32)       # [2, E]
    edge_attr = jax.random.uniform(
        k_attr, (edge_index.shape[1],), jnp.float32, minval=0.1, maxval=1.0)

    # deterministic parameter init (reset_parameters): eps = 0, beta = 1
    out = relation_conv(x, edge_index, edge_attr, eps=0.0, beta=1.0)
    jax.block_until_ready(out)

    assert out.shape == (N, F) and out.dtype == jnp.float32
    assert bool(jnp.all(jnp.isfinite(out)))

    ref = relation_conv_reference(x, edge_index, edge_attr, eps=0.0, beta=1.0)
    max_err = float(jnp.max(jnp.abs(out - ref)))
    assert max_err < 3e-2, f"max abs error vs reference: {max_err}"
    print("KERNEL_OK")
</pallas_src>

<mosaic_0001>
module attributes {stable_mosaic.version = 11 : i64} {
  func.func @relation_conv_kernel(%arg0: i32, %arg1: i32, %arg2: memref<128x128xbf16, #tpu.memory_space<vmem>>, %arg3: memref<128x128xi8, #tpu.memory_space<vmem>>, %arg4: memref<128x128xbf16, #tpu.memory_space<vmem>>, %arg5: memref<1xf32, #tpu.memory_space<smem>>, %arg6: memref<1xf32, #tpu.memory_space<smem>>, %arg7: memref<128x128xf32, #tpu.memory_space<vmem>>, %arg8: memref<128x128xbf16, #tpu.memory_space<vmem>>, %arg9: memref<128x1xf32, #tpu.memory_space<vmem>>) attributes {dimension_semantics = [#tpu.dimension_semantics<parallel>, #tpu.dimension_semantics<arbitrary>], iteration_bounds = array<i64: 1, 1>, scalar_prefetch = 0 : i64, scratch_operands = 2 : i64, tpu.core_type = #tpu.core_type<tc>, window_params = [{transform_indices = @transform_0, window_bounds = array<i64: 128, 128>}, {transform_indices = @transform_1, window_bounds = array<i64: 128, 128>}, {transform_indices = @transform_2, window_bounds = array<i64: 128, 128>}, {transform_indices = @transform_3, window_bounds = array<i64: 1>}, {transform_indices = @transform_4, window_bounds = array<i64: 1>}, {transform_indices = @transform_5, window_bounds = array<i64: 128, 128>}]} {
    %c0_i32 = arith.constant 0 : i32
    %0 = arith.cmpi eq, %arg1, %c0_i32 : i32
    %1 = arith.extui %0 : i1 to i32
    %c0_i32_0 = arith.constant 0 : i32
    %2 = arith.cmpi ne, %1, %c0_i32_0 : i32
    scf.if %2 {
      %c0_9 = arith.constant 0 : index
      %16 = memref.load %arg5[%c0_9] : memref<1xf32, #tpu.memory_space<smem>>
      %c0_10 = arith.constant 0 : index
      %17 = memref.load %arg6[%c0_10] : memref<1xf32, #tpu.memory_space<smem>>
      %c0_11 = arith.constant 0 : index
      %c0_12 = arith.constant 0 : index
      %18 = vector.load %arg2[%c0_11, %c0_12] : memref<128x128xbf16, #tpu.memory_space<vmem>>, vector<128x128xbf16>
      %19 = arith.extf %18 : vector<128x128xbf16> to vector<128x128xf32>
      %c0_13 = arith.constant 0 : index
      %c0_14 = arith.constant 0 : index
      %20 = vector.load %arg3[%c0_13, %c0_14] : memref<128x128xi8, #tpu.memory_space<vmem>>, vector<128x128xi8>
      %21 = arith.sitofp %20 : vector<128x128xi8> to vector<128x128xf32>
      %cst_15 = arith.constant 0.000000e+00 : f32
      %22 = vector.broadcast %cst_15 : f32 to vector<128x128xf32>
      %23 = arith.cmpf ogt, %21, %22 : vector<128x128xf32>
      %24 = arith.mulf %19, %19 : vector<128x128xf32>
      %cst_16 = arith.constant dense<0.000000e+00> : vector<128xf32>
      %25 = vector.multi_reduction <add>, %24, %cst_16 [1] : vector<128x128xf32> to vector<128xf32>
      %26 = vector.shape_cast %25 : vector<128xf32> to vector<128x1xf32>
      %cst_17 = arith.constant 1.000000e-24 : f32
      %27 = vector.broadcast %cst_17 : f32 to vector<128x1xf32>
      %28 = arith.maximumf %26, %27 : vector<128x1xf32>
      %29 = math.rsqrt %28 : vector<128x1xf32>
      %30 = vector.broadcast %16 : f32 to vector<128x1xf32>
      %31 = arith.mulf %30, %29 : vector<128x1xf32>
      %32 = vector.broadcast %31 : vector<128x1xf32> to vector<128x128xf32>
      %33 = arith.mulf %32, %19 : vector<128x128xf32>
      %cst_18 = arith.constant -1.000000e+30 : f32
      %34 = vector.broadcast %cst_18 : f32 to vector<128x128xf32>
      %35 = arith.select %23, %33, %34 : vector<128x128xi1>, vector<128x128xf32>
      %cst_19 = arith.constant dense<0xFF800000> : vector<128xf32>
      %36 = vector.multi_reduction <maximumf>, %35, %cst_19 [1] : vector<128x128xf32> to vector<128xf32>
      %37 = vector.shape_cast %36 : vector<128xf32> to vector<128x1xf32>
      %38 = vector.broadcast %16 : f32 to vector<128x1xf32>
      %39 = arith.maximumf %37, %38 : vector<128x1xf32>
      %40 = vector.broadcast %39 : vector<128x1xf32> to vector<128x128xf32>
      %41 = arith.subf %33, %40 : vector<128x128xf32>
      %42 = math.exp %41 : vector<128x128xf32>
      %cst_20 = arith.constant 0.000000e+00 : f32
      %43 = vector.broadcast %cst_20 : f32 to vector<128x128xf32>
      %44 = arith.select %23, %42, %43 : vector<128x128xi1>, vector<128x128xf32>
      %45 = vector.broadcast %16 : f32 to vector<128x1xf32>
      %46 = arith.subf %45, %39 : vector<128x1xf32>
      %47 = math.exp %46 : vector<128x1xf32>
      %cst_21 = arith.constant dense<0.000000e+00> : vector<128xf32>
      %48 = vector.multi_reduction <add>, %44, %cst_21 [1] : vector<128x128xf32> to vector<128xf32>
      %49 = vector.shape_cast %48 : vector<128xf32> to vector<128x1xf32>
      %50 = arith.addf %49, %47 : vector<128x1xf32>
      %cst_22 = arith.constant 1.000000e-16 : f32
      %51 = vector.broadcast %cst_22 : f32 to vector<128x1xf32>
      %52 = arith.addf %50, %51 : vector<128x1xf32>
      %53 = tpu.reciprocal %52 {approx = true} : vector<128x1xf32> -> vector<128x1xf32>
      %54 = vector.broadcast %53 : vector<128x1xf32> to vector<128x128xf32>
      %55 = arith.mulf %44, %54 : vector<128x128xf32>
      %56 = arith.truncf %55 : vector<128x128xf32> to vector<128x128xbf16>
      %c0_23 = arith.constant 0 : index
      %c0_24 = arith.constant 0 : index
      %57 = vector.load %arg8[%c0_23, %c0_24] : memref<128x128xbf16, #tpu.memory_space<vmem>>, vector<128x128xbf16>
      tpu.vector_store %arg8[%c0_23, %c0_24], %56 {strides = array<i32>} : memref<128x128xbf16, #tpu.memory_space<vmem>>, vector<128x128xbf16>,
      %cst_25 = arith.constant 1.000000e+00 : f32
      %58 = arith.addf %cst_25, %17 : f32
      %59 = arith.mulf %47, %53 : vector<128x1xf32>
      %60 = vector.broadcast %58 : f32 to vector<128x1xf32>
      %61 = arith.addf %60, %59 : vector<128x1xf32>
      %c0_26 = arith.constant 0 : index
      %c0_27 = arith.constant 0 : index
      %62 = vector.load %arg9[%c0_26, %c0_27] : memref<128x1xf32, #tpu.memory_space<vmem>>, vector<128x1xf32>
      tpu.vector_store %arg9[%c0_26, %c0_27], %61 {strides = array<i32>} : memref<128x1xf32, #tpu.memory_space<vmem>>, vector<128x1xf32>,
    } else {
    }
    %c0 = arith.constant 0 : index
    %c0_1 = arith.constant 0 : index
    %3 = vector.load %arg8[%c0, %c0_1] : memref<128x128xbf16, #tpu.memory_space<vmem>>, vector<128x128xbf16>
    %c0_2 = arith.constant 0 : index
    %c0_3 = arith.constant 0 : index
    %4 = vector.load %arg4[%c0_2, %c0_3] : memref<128x128xbf16, #tpu.memory_space<vmem>>, vector<128x128xbf16>
    %cst = arith.constant dense<0.000000e+00> : vector<128x128xf32>
    %5 = tpu.matmul %3, %4, %cst {dimension_numbers = #tpu.dot_dimension_numbers<[1], [0], [0], [1], [0, 0, 1, 1], [], []>} : vector<128x128xbf16>, vector<128x128xbf16>, vector<128x128xf32> -> vector<128x128xf32>
    %c128_i32 = arith.constant 128 : i32
    %6 = arith.muli %arg0, %c128_i32 : i32
    %7 = tpu.assume_multiple %6, 128 : i32
    %8 = arith.index_cast %7 : i32 to index
    %c0_4 = arith.constant 0 : index
    %9 = vector.load %arg4[%8, %c0_4] : memref<128x128xbf16, #tpu.memory_space<vmem>>, vector<128x128xbf16>
    %10 = arith.extf %9 : vector<128x128xbf16> to vector<128x128xf32>
    %c0_5 = arith.constant 0 : index
    %c0_6 = arith.constant 0 : index
    %11 = vector.load %arg9[%c0_5, %c0_6] : memref<128x1xf32, #tpu.memory_space<vmem>>, vector<128x1xf32>
    %12 = vector.broadcast %11 : vector<128x1xf32> to vector<128x128xf32>
    %13 = arith.mulf %12, %10 : vector<128x128xf32>
    %14 = arith.addf %5, %13 : vector<128x128xf32>
    %c0_7 = arith.constant 0 : index
    %c0_8 = arith.constant 0 : index
    %15 = vector.load %arg7[%c0_7, %c0_8] : memref<128x128xf32, #tpu.memory_space<vmem>>, vector<128x128xf32>
    tpu.vector_store %arg7[%c0_7, %c0_8], %14 {strides = array<i32>} : memref<128x128xf32, #tpu.memory_space<vmem>>, vector<128x128xf32>,
    return
  }
  func.func @transform_0(%arg0: i32, %arg1: i32) -> (i32, i32) {
    %c0_i32 = arith.constant 0 : i32
    %c0_i32_0 = arith.constant 0 : i32
    return %arg0, %c0_i32 : i32, i32
  }
  func.func @transform_1(%arg0: i32, %arg1: i32) -> (i32, i32) {
    %c0_i32 = arith.constant 0 : i32
    %c0_i32_0 = arith.constant 0 : i32
    return %arg0, %c0_i32 : i32, i32
  }
  func.func @transform_2(%arg0: i32, %arg1: i32) -> (i32, i32) {
    %c0_i32 = arith.constant 0 : i32
    %c0_i32_0 = arith.constant 0 : i32
    return %c0_i32, %arg1 : i32, i32
  }
  func.func @transform_3(%arg0: i32, %arg1: i32) -> i32 {
    %c0_i32 = arith.constant 0 : i32
    %c0_i32_0 = arith.constant 0 : i32
    return %c0_i32 : i32
  }
  func.func @transform_4(%arg0: i32, %arg1: i32) -> i32 {
    %c0_i32 = arith.constant 0 : i32
    %c0_i32_0 = arith.constant 0 : i32
    return %c0_i32 : i32
  }
  func.func @transform_5(%arg0: i32, %arg1: i32) -> (i32, i32) {
    %c0_i32 = arith.constant 0 : i32
    return %arg0, %arg1 : i32, i32
  }
}

</mosaic_0001>

<bundles_post_ra>
// kernel: tpu_custom_call.1
= control target key start
LH: loop header
LB: loop body
LE: loop exit
PB: predicated region body
PF: predicated region fallthrough
CT: control target
= control target key end

     0   :  { %12 = vsyncpa [#allocation7], 0  ;;  %s2543_s0 = inlined_call_operand.hbm [shape: bf16[128,128], index: 0, kind: input, shape index: {}]   ;;  %s2544_s1 = inlined_call_operand.hbm [shape: s8[128,128], index: 1, kind: input, shape index: {}]   ;;  %s2545_s2 = inlined_call_operand.hbm [shape: bf16[128,128], index: 2, kind: input, shape index: {}]   ;;  %s2546_s3 = inlined_call_operand.<no memory space> [shape: f32[1], index: 3, kind: input, shape index: {}]   ;;  %s2547_s4 = inlined_call_operand.<no memory space> [shape: f32[1], index: 4, kind: input, shape index: {}]   ;;  %s2548_s5 = inlined_call_operand.hbm [shape: f32[128,128], index: 5, kind: output, shape index: {}]  }
   0x1   :  { %13 = vsyncpa [#allocation10], 0  ;;  %s32_s20 = sshll.u32 %s2544_s1, 4  ;;  %s33_s20 = int_to_ptr.hbm [resolvable:$true] %s32_s20 }
   0x2   :  { %14 = vsyncpa [#allocation8], 0  ;;  %s1607_s21 = smov [#allocation9]   ;;  %s19_s25 = sshll.u32 %s2543_s0, 4  ;;  %s20_s25 = int_to_ptr.hbm [resolvable:$true] %s19_s25 }
   0x3   :  { %s34_s22 = sshll.u32 %s1607_s21, 4  ;;  %s1608_s26 = smov 128   ;;  %s35_s22 = int_to_ptr.vmem [resolvable:$true] %s34_s22 }
   0x4   :  { %s1609_s27 = smov 8   ;;  %s1610_s28 = smov [#allocation6]  }
   0x5   :  { %40 = dma.hbm_to_vmem [thread:$0]  %s33_s20, 512, %s35_s22, [#allocation10], %s1608_s26, %s1608_s26, %s1609_s27  }
   0x6   :  { %s21_s29 = sshll.u32 %s1610_s28, 4  ;;  %s1611_s1 = smov 64   ;;  %s22_s29 = int_to_ptr.vmem [resolvable:$true] %s21_s29 }
   0x7   :  { %s1612_s30 = smov 4   ;;  %s45_s8 = sshll.u32 %s2545_s2, 4  ;;  %s46_s8 = int_to_ptr.hbm [resolvable:$true] %s45_s8 }
   0x8   :  { %27 = dma.hbm_to_vmem [thread:$0]  %s20_s25, 1024, %s22_s29, [#allocation7], %s1611_s1, %s1611_s1, %s1612_s30  }
   0x9   :  { %s1613_s9 = smov [#allocation11]  }
   0xa   :  { %s47_s0 = sshll.u32 %s1613_s9, 4  ;;  %s48_s0 = int_to_ptr.vmem [resolvable:$true] %s47_s0 }
   0xb   :  { %53 = dma.hbm_to_vmem [thread:$0]  %s46_s8, 1024, %s48_s0, [#allocation10], %s1611_s1, %s1611_s1, %s1612_s30  }
   0xc   :  { %1601 = dma.done.wait [#allocation7], 1024  }
   0xd   :  { %1602 = vsyncadd [#allocation7], 4294966272 }
   0xe   :  { %1603 = dma.done.wait [#allocation10], 1536  }
   0xf   :  { %1604 = vsyncadd [#allocation10], 4294965760  ;;  %v1325_v0 = vld [vmem:[#allocation6 + $0x30] sm:$0xff]   ;;  %v1323_v1 = vld [vmem:[#allocation6 + $0x20] sm:$0xff]   ;;  %s721_s12 = sadd.f32 1.0, %s2547_s4  ;;  %s1615_s4 = smov [#allocation12]  }
  0x10   :  { %v1217_v2 = vld [vmem:[#allocation6] sm:$0xff]   ;;  %v1658_v3 = vunpack.c.l.bf16 %v1325_v0  ;;  %v1660_v4 = vunpack.c.l.bf16 %v1323_v1  ;;  %v1670_v9 = vunpack.c.h.bf16 %v1325_v0  ;;  %v1672_v10 = vunpack.c.h.bf16 %v1323_v1  ;;  %v1321_v15 = vld [vmem:[#allocation6 + $0x10] sm:$0xff]   ;;  %v1324_v16 = vld [vmem:[#allocation6 + $0x28] sm:$0xff]   ;;  %s1118_s13 = sshll.u32 %s1615_s4, 4  ;;  %s1120_s16 = sshll.u32 %s2548_s5, 4  ;;  %s1119_s13 = int_to_ptr.vmem [resolvable:$true] %s1118_s13  ;;  %s1121_s16 = int_to_ptr.hbm [resolvable:$true] %s1120_s16 }
  0x11   :  { %v1662_v5 = vunpack.c.l.bf16 %v1217_v2  ;;  %v1674_v11 = vunpack.c.h.bf16 %v1217_v2  ;;  %v1682_v17 = vunpack.c.h.bf16 %v1321_v15  ;;  %v1684_v18 = vunpack.c.l.bf16 %v1321_v15  ;;  %v1326_v23 = vld [vmem:[#allocation6 + $0x38] sm:$0xff]   ;;  %v1320_v30 = vld [vmem:[#allocation6 + $0x8] sm:$0xff]   ;;  %v1737_v52 = vld [vmem:[#allocation9 + $0x10] sm:$0xff] }
  0x12   :  { %v172_v6 = vmul.f32 %v1658_v3, %v1658_v3  ;;  %v168_v7 = vmul.f32 %v1660_v4, %v1660_v4  ;;  %v173_v12 = vmul.f32 %v1670_v9, %v1670_v9  ;;  %v169_v13 = vmul.f32 %v1672_v10, %v1672_v10  ;;  %v1322_v31 = vld [vmem:[#allocation6 + $0x18] sm:$0xff]   ;;  %v1756_v62 = vld [vmem:[#allocation9] sm:$0xff] }
  0x13   :  { %v160_v8 = vmul.f32 %v1662_v5, %v1662_v5  ;;  %v161_v14 = vmul.f32 %v1674_v11, %v1674_v11  ;;  %v1686_v19 = vunpack.c.l.bf16 %v1324_v16  ;;  %v165_v20 = vmul.f32 %v1682_v17, %v1682_v17  ;;  %v1739_v53 = vld [vmem:[#allocation9 + $0x18] sm:$0xff] }
  0x14   :  { %200 = vadd.xlane.f32.xlu1 %v172_v6  ;;  %192 = vadd.xlane.f32.xlu0 %v168_v7  ;;  %v164_v21 = vmul.f32 %v1684_v18, %v1684_v18  ;;  %v1694_v24 = vunpack.c.l.bf16 %v1326_v23  ;;  %v1696_v25 = vunpack.c.h.bf16 %v1324_v16  ;;  %v1698_v26 = vunpack.c.h.bf16 %v1326_v23 }
  0x15   :  { %176 = vadd.xlane.f32.xlu2 %v160_v8  ;;  %v170_v22 = vmul.f32 %v1686_v19, %v1686_v19  ;;  %v1706_v32 = vunpack.c.h.bf16 %v1320_v30  ;;  %v1708_v33 = vunpack.c.l.bf16 %v1320_v30  ;;  %v1710_v34 = vunpack.c.l.bf16 %v1322_v31 }
  0x16   :  { %v174_v27 = vmul.f32 %v1694_v24, %v1694_v24  ;;  %v171_v28 = vmul.f32 %v1696_v25, %v1696_v25  ;;  %v175_v29 = vmul.f32 %v1698_v26, %v1698_v26  ;;  %v1718_v38 = vunpack.c.h.bf16 %v1322_v31 }
  0x17   :  { %v163_v35 = vmul.f32 %v1706_v32, %v1706_v32  ;;  %v162_v36 = vmul.f32 %v1708_v33, %v1708_v33  ;;  %v166_v37 = vmul.f32 %v1710_v34, %v1710_v34  ;;  %v120_v59 = vunpack.c.0.s8 %v1737_v52 }
  0x18   :  { %v167_v39 = vmul.f32 %v1718_v38, %v1718_v38  ;;  %v124_v60 = vunpack.c.0.s8 %v1739_v53  ;;  %v1765_v8 = vstv %s2546_s3  ;;  %v121_v30 = vunpack.c.1.s8 %v1737_v52 }
  0x19   :  { %v1760_v7 = vcvt.s32.f32 %v120_v59 }
  0x1b   :  { %2559 = vst [vmem:[#allocation16_spill] sm:$0xff] %v1760_v7  ;;  %vm2554_vm1 = vcmp.gt.f32.partialorder %v1760_v7, 0.0 }
  0x1c   :  { %202 = vadd.xlane.f32.xlu1 %v173_v12  ;;  %194 = vadd.xlane.f32.xlu0 %v169_v13  ;;  %v1767_v12 = vcvt.s32.f32 %v124_v60  ;;  %v112_v13 = vunpack.c.0.s8 %v1756_v62 }
  0x1d   :  { %178 = vadd.xlane.f32.xlu2 %v161_v14 }
  0x1e   :  { %2560 = vst [vmem:[#allocation17_spill] sm:$0xff] %v1767_v12  ;;  %vm2553_vm6 = vcmp.gt.f32.partialorder %v1767_v12, 0.0 }
  0x24   :  { %186 = vadd.xlane.f32.xlu1 %v165_v20  ;;  %184 = vadd.xlane.f32.xlu0 %v164_v21 }
  0x25   :  { %196 = vadd.xlane.f32.xlu2 %v170_v22  ;;  %v125_v22 = vunpack.c.1.s8 %v1739_v53 }
  0x2c   :  { %204 = vadd.xlane.f32.xlu1 %v174_v27  ;;  %198 = vadd.xlane.f32.xlu0 %v171_v28 }
  0x2d   :  { %206 = vadd.xlane.f32.xlu2 %v175_v29 }
  0x34   :  { %182 = vadd.xlane.f32.xlu1 %v163_v35  ;;  %180 = vadd.xlane.f32.xlu0 %v162_v36 }
  0x35   :  { %188 = vadd.xlane.f32.xlu2 %v166_v37  ;;  %v113_v37 = vunpack.c.1.s8 %v1756_v62 }
  0x3c   :  { %190 = vadd.xlane.f32.xlu0 %v167_v39 }
  0x87   :  { %v201_v40 = vpop.xlane.xlu1 %200  ;;  %v193_v41 = vpop.xlane.xlu0 %192 }
  0x88   :  { %v1722_v42 = vmax.f32 %v201_v40, 1e-24  ;;  %v1724_v43 = vmax.f32 %v193_v41, 1e-24  ;;  %v177_v44 = vpop.xlane.xlu2 %176 }
  0x89   :  { %v1728_v45 = vmax.f32 %v177_v44, 1e-24 }
  0x8a   :  { %1377 = vrsqrt.f32 %v1722_v42  ;;  %vm310_vm2 = vweird.f32 %v1724_v43  ;;  %vm350_vm3 = vweird.f32 %v1722_v42 }
  0x8b   :  { %1379 = vrsqrt.f32 %v1724_v43 }
  0x8c   :  { %1381 = vrsqrt.f32 %v1728_v45 }
  0x8f   :  { %v203_v46 = vpop.xlane.xlu1 %202  ;;  %v195_v47 = vpop.xlane.xlu0 %194 }
  0x90   :  { %v1731_v48 = vpop.eup %1377  ;;  %v1733_v49 = vmax.f32 %v203_v46, 1e-24  ;;  %v1735_v50 = vmax.f32 %v195_v47, 1e-24  ;;  %v179_v51 = vpop.xlane.xlu2 %178 }
  0x91   :  { %v1741_v54 = vpop.eup %1379  ;;  %v345_v55 = vmul.f32 %v1731_v48, %v1722_v42  ;;  %v1745_v56 = vmax.f32 %v179_v51, 1e-24  ;;  %v1804_v51 = vcvt.s32.f32 %v112_v13  ;;  %vm351_vm4 = vweird.f32 %v1731_v48 }
  0x92   :  { %v305_v57 = vmul.f32 %v1741_v54, %v1724_v43  ;;  %1383 = vrsqrt.f32 %v1733_v49  ;;  %v1758_v63 = vpop.eup %1381  ;;  %vm311_vm0 = vweird.f32 %v1741_v54  ;;  %vm1839_vm7 = vmor %vm350_vm3, %vm351_vm4  ;;  %vm360_vm8 = vweird.f32 %v1733_v49 }
  0x93   :  { %v346_v58 = vmul.f32 %v1731_v48, %v345_v55  ;;  %1385 = vrsqrt.f32 %v1735_v50  ;;  %v225_v15 = vmul.f32 %v1758_v63, %v1728_v45  ;;  %vm1808_vm5 = vmor %vm310_vm2, %vm311_vm0  ;;  %vm320_vm9 = vweird.f32 %v1735_v50 }
  0x94   :  { %v306_v61 = vmul.f32 %v1741_v54, %v305_v57  ;;  %1387 = vrsqrt.f32 %v1745_v56  ;;  %vm240_vm10 = vweird.f32 %v1745_v56  ;;  %vm231_vm15 = vweird.f32 %v1758_v63 }
  0x95   :  { %v347_v0 = vmul.f32 0.5, %v346_v58  ;;  %v226_v41 = vmul.f32 %v1758_v63, %v225_v15  ;;  %vm230_vm4 = vweird.f32 %v1728_v45 }
  0x96   :  { %v307_v1 = vmul.f32 0.5, %v306_v61  ;;  %v1817_v61 = vcvt.s32.f32 %v125_v22 }
  0x97   :  { %v187_v2 = vpop.xlane.xlu1 %186  ;;  %v185_v6 = vpop.xlane.xlu0 %184  ;;  %v348_v35 = vsub.f32 1.5, %v347_v0  ;;  %v1819_v0 = vcvt.s32.f32 %v121_v30  ;;  %v1827_v13 = vmul.f32 0.5, %v226_v41 }
  0x98   :  { %v1770_v14 = vpop.eup %1383  ;;  %v1774_v16 = vmax.f32 %v187_v2, 1e-24  ;;  %v1776_v20 = vmax.f32 %v185_v6, 1e-24  ;;  %v197_v21 = vpop.xlane.xlu2 %196  ;;  %v308_v27 = vsub.f32 1.5, %v307_v1  ;;  %v1821_v1 = vcvt.s32.f32 %v113_v37  ;;  %v1823_v2 = vld [vmem:[#allocation9 + $0x8] sm:$0xff] }
  0x99   :  { %v1779_v23 = vpop.eup %1385  ;;  %v355_v28 = vmul.f32 %v1770_v14, %v1733_v49  ;;  %v1783_v29 = vmax.f32 %v197_v21, 1e-24  ;;  %v349_v58 = vmul.f32 %v1731_v48, %v348_v35  ;;  %vm361_vm11 = vweird.f32 %v1770_v14 }
  0x9a   :  { %v1786_v31 = vpop.eup %1387  ;;  %v315_v36 = vmul.f32 %v1779_v23, %v1735_v50  ;;  %1389 = vrsqrt.f32 %v1774_v16  ;;  %v309_v47 = vmul.f32 %v1741_v54, %v308_v27  ;;  %vm2552_vm12 = vcmp.gt.f32.partialorder %v1817_v61, 0.0  ;;  %vm1891_vm0 = vmor %vm360_vm8, %vm361_vm11 }
  0x9b   :  { %v356_v39 = vmul.f32 %v1770_v14, %v355_v28  ;;  %v235_v40 = vmul.f32 %v1786_v31, %v1745_v56  ;;  %1391 = vrsqrt.f32 %v1776_v20  ;;  %v353_v42 = vsel %vm1839_vm7, %v1731_v48, %v349_v58 }
  0x9c   :  { %v316_v44 = vmul.f32 %v1779_v23, %v315_v36  ;;  %1393 = vrsqrt.f32 %v1783_v29  ;;  %v313_v60 = vsel %vm1808_vm5, %v1741_v54, %v309_v47  ;;  %v397_v58 = vmul.f32 %v1765_v8, %v353_v42 }
  0x9d   :  { %v236_v46 = vmul.f32 %v1786_v31, %v235_v40  ;;  %v357_v57 = vmul.f32 0.5, %v356_v39  ;;  %v393_v36 = vmul.f32 %v1765_v8, %v313_v60  ;;  %vm321_vm13 = vweird.f32 %v1779_v23 }
  0x9e   :  { %v317_v15 = vmul.f32 0.5, %v316_v44  ;;  %v116_v44 = vunpack.c.0.s8 %v1823_v2  ;;  %vm241_vm14 = vweird.f32 %v1786_v31  ;;  %vm2556_vm2 = vcmp.gt.f32.partialorder %v1819_v0, 0.0  ;;  %vm1929_vm5 = vmor %vm320_vm9, %vm321_vm13 }
  0x9f   :  { %v205_v43 = vpop.xlane.xlu1 %204  ;;  %v199_v59 = vpop.xlane.xlu0 %198  ;;  %v237_v22 = vmul.f32 0.5, %v236_v46  ;;  %v358_v39 = vsub.f32 1.5, %v357_v57  ;;  %v228_v46 = vsub.f32 1.5, %v1827_v13  ;;  %v1867_v57 = vmul.f32 %v1660_v4, %v393_v36  ;;  %vm1942_vm8 = vmor %vm240_vm10, %vm241_vm14 }
  0xa0   :  { %v1825_v6 = vpop.eup %1389  ;;  %v1829_v21 = vmax.f32 %v205_v43, 1e-24  ;;  %v1831_v27 = vmax.f32 %v199_v59, 1e-24  ;;  %v207_v28 = vpop.xlane.xlu2 %206  ;;  %v318_v47 = vsub.f32 1.5, %v317_v15  ;;  %v1880_v4 = vmul.f32 %v1658_v3, %v397_v58 }
  0xa1   :  { %v1833_v35 = vpop.eup %1391  ;;  %v1844_v30 = vmax.f32 %v207_v28, 1e-24  ;;  %v275_v40 = vmul.f32 %v1825_v6, %v1774_v16  ;;  %v238_v48 = vsub.f32 1.5, %v237_v22  ;;  %v359_v59 = vmul.f32 %v1770_v14, %v358_v39 }
  0xa2   :  { %v1847_v37 = vpop.eup %1393  ;;  %1395 = vrsqrt.f32 %v1829_v21  ;;  %v265_v41 = vmul.f32 %v1833_v35, %v1776_v20  ;;  %v425_v13 = vsel %vm2554_vm1, %v1867_v57, -1e+30  ;;  %2565 = vst [vmem:[#allocation18_spill] sm:$0xff] %v1880_v4  ;;  %v1882_v54 = vcvt.s32.f32 %v116_v44 }
  0xa3   :  { %1397 = vrsqrt.f32 %v1831_v27  ;;  %v325_v55 = vmul.f32 %v1847_v37, %v1783_v29  ;;  %v276_v43 = vmul.f32 %v1825_v6, %v275_v40  ;;  %449 = vmax.xlane.f32.xlu1 %v425_v13  ;;  %v319_v42 = vmul.f32 %v1779_v23, %v318_v47 }
  0xa4   :  { %1399 = vrsqrt.f32 %v1844_v30  ;;  %v266_v60 = vmul.f32 %v1833_v35, %v265_v41  ;;  %v429_v44 = vsel %vm2553_vm6, %v1880_v4, -1e+30  ;;  %vm2555_vm3 = vcmp.gt.f32.partialorder %v1821_v1, 0.0 }
  0xa5   :  { %v326_v39 = vmul.f32 %v1847_v37, %v325_v55  ;;  %v363_v55 = vsel %vm1891_vm0, %v1770_v14, %v359_v59  ;;  %v239_v13 = vmul.f32 %v1786_v31, %v238_v48  ;;  %v1917_v47 = vmul.f32 0.5, %v276_v43  ;;  %457 = vmax.xlane.f32.xlu0 %v429_v44 }
  0xa6   :  { %v1923_v12 = vmul.f32 %v1758_v63, %v228_v46  ;;  %v267_v48 = vmul.f32 0.5, %v266_v60  ;;  %vm270_vm7 = vweird.f32 %v1776_v20  ;;  %v323_v56 = vsel %vm1929_vm5, %v1779_v23, %v319_v42 }
  0xa7   :  { %v183_v15 = vpop.xlane.xlu1 %182  ;;  %v181_v28 = vpop.xlane.xlu0 %180  ;;  %v1946_v46 = vmul.f32 0.5, %v326_v39  ;;  %v243_v4 = vsel %vm1942_vm8, %v1786_v31, %v239_v13  ;;  %vm271_vm9 = vweird.f32 %v1833_v35  ;;  %vm330_vm10 = vweird.f32 %v1783_v29  ;;  %vm2006_vm8 = vmor %vm230_vm4, %vm231_vm15 }
  0xa8   :  { %v1884_v22 = vpop.eup %1395  ;;  %v1896_v3 = vmax.f32 %v183_v15, 1e-24  ;;  %v1898_v40 = vmax.f32 %v181_v28, 1e-24  ;;  %v189_v58 = vpop.xlane.xlu2 %188  ;;  %vm331_vm11 = vweird.f32 %v1847_v37  ;;  %v394_v23 = vmul.f32 %v1765_v8, %v323_v56  ;;  %vm272_vm15 = vmor %vm270_vm7, %vm271_vm9 }
  0xa9   :  { %v1902_v41 = vpop.eup %1397  ;;  %v365_v49 = vmul.f32 %v1884_v22, %v1829_v21  ;;  %v1949_v36 = vmax.f32 %v189_v58, 1e-24  ;;  %v386_v42 = vmul.f32 %v1765_v8, %v243_v4  ;;  %vm2557_vm13 = vcmp.gt.f32.partialorder %v1804_v51, 0.0 }
  0xaa   :  { %v1914_v15 = vpop.eup %1399  ;;  %v335_v28 = vmul.f32 %v1902_v41, %v1831_v27  ;;  %1401 = vrsqrt.f32 %v1896_v3  ;;  %v278_v13 = vsub.f32 1.5, %v1917_v47  ;;  %v328_v14 = vsub.f32 1.5, %v1946_v46 }
  0xab   :  { %v366_v43 = vmul.f32 %v1884_v22, %v365_v49  ;;  %v375_v59 = vmul.f32 %v1914_v15, %v1844_v30  ;;  %1403 = vrsqrt.f32 %v1898_v40  ;;  %v398_v49 = vmul.f32 %v1765_v8, %v363_v55 }
  0xac   :  { %v336_v60 = vmul.f32 %v1902_v41, %v335_v28  ;;  %1405 = vrsqrt.f32 %v1949_v36  ;;  %v268_v55 = vsub.f32 1.5, %v267_v48  ;;  %vm341_vm14 = vweird.f32 %v1902_v41 }
  0xad   :  { %v1952_v44 = vmul.f32 0.5, %v366_v43  ;;  %v376_v7 = vmul.f32 %v1914_v15, %v375_v59  ;;  %v1966_v58 = vmul.f32 %v1670_v9, %v398_v49  ;;  %v1991_v46 = vmul.f32 %v1672_v10, %v394_v23 }
  0xae   :  { %v1962_v39 = vmul.f32 0.5, %v336_v60  ;;  %vm280_vm0 = vweird.f32 %v1774_v16  ;;  %vm281_vm5 = vweird.f32 %v1825_v6  ;;  %v1999_v56 = vmul.f32 %v1674_v11, %v386_v42 }
  0xaf   :  { %v191_v28 = vpop.xlane.xlu0 %190  ;;  %v430_v9 = vsel %vm2552_vm12, %v1966_v58, -1e+30  ;;  %v368_v59 = vsub.f32 1.5, %v1952_v44  ;;  %v1986_v4 = vmul.f32 0.5, %v376_v7  ;;  %vm340_vm12 = vweird.f32 %v1831_v27 }
  0xb0   :  { %v1973_v31 = vpop.eup %1401  ;;  %v1980_v48 = vmax.f32 %v191_v28, 1e-24  ;;  %459 = vmax.xlane.f32.xlu1 %v430_v9  ;;  %v338_v60 = vsub.f32 1.5, %v1962_v39  ;;  %vm381_vm6 = vweird.f32 %v1914_v15  ;;  %v426_v11 = vsel %vm2556_vm2, %v1991_v46, -1e+30 }
  0xb1   :  { %v1982_v43 = vpop.eup %1403  ;;  %v255_v50 = vmul.f32 %v1973_v31, %v1896_v3  ;;  %vm2558_vm1 = vcmp.gt.f32.partialorder %v1882_v54, 0.0  ;;  %v269_v39 = vmul.f32 %v1833_v35, %v268_v55  ;;  %451 = vmax.xlane.f32.xlu2 %v426_v11  ;;  %v418_v42 = vsel %vm2555_vm3, %v1999_v56, -1e+30 }
  0xb2   :  { %v245_v49 = vmul.f32 %v1982_v43, %v1898_v40  ;;  %1407 = vrsqrt.f32 %v1980_v48  ;;  %v2018_v23 = vpop.eup %1405  ;;  %v233_v28 = vsel %vm2006_vm8, %v1758_v63, %v1923_v12  ;;  %v122_v55 = vunpack.c.2.s8 %v1737_v52  ;;  %435 = vmax.xlane.f32.xlu0 %v418_v42 }
  0xb3   :  { %v256_v7 = vmul.f32 %v1973_v31, %v255_v50  ;;  %v378_v9 = vsub.f32 1.5, %v1986_v4  ;;  %vm380_vm4 = vweird.f32 %v1844_v30  ;;  %v285_v50 = vmul.f32 %v2018_v23, %v1949_v36 }
  0xb4   :  { %v246_v45 = vmul.f32 %v1982_v43, %v245_v49  ;;  %v273_v49 = vsel %vm272_vm15, %v1833_v35, %v269_v39  ;;  %vm370_vm7 = vweird.f32 %v1829_v21  ;;  %vm371_vm9 = vweird.f32 %v1884_v22  ;;  %vm332_vm15 = vmor %vm330_vm10, %vm331_vm11 }
  0xb5   :  { %v2035_v20 = vmul.f32 0.5, %v256_v7  ;;  %v389_v63 = vmul.f32 %v1765_v8, %v273_v49  ;;  %v385_v12 = vmul.f32 %v1765_v8, %v233_v28  ;;  %v2044_v4 = vcvt.s32.f32 %v122_v55  ;;  %vm2088_vm11 = vmor %vm340_vm12, %vm341_vm14 }
  0xb6   :  { %v247_v10 = vmul.f32 0.5, %v246_v45  ;;  %vm251_vm8 = vweird.f32 %v1982_v43  ;;  %v286_v7 = vmul.f32 %v2018_v23, %v285_v50  ;;  %v329_v11 = vmul.f32 %v1847_v37, %v328_v14  ;;  %vm2104_vm12 = vmor %vm280_vm0, %vm281_vm5 }
  0xb7   :  { %v123_v42 = vunpack.c.3.s8 %v1737_v52  ;;  %v258_v39 = vsub.f32 1.5, %v2035_v20  ;;  %v2058_v28 = vmul.f32 %v1684_v18, %v389_v63  ;;  %v2061_v55 = vmul.f32 %v1662_v5, %v385_v12  ;;  %vm382_vm0 = vmor %vm380_vm4, %vm381_vm6 }
  0xb8   :  { %v2050_v35 = vpop.eup %1407  ;;  %v248_v45 = vsub.f32 1.5, %v247_v10  ;;  %vm250_vm3 = vweird.f32 %v1898_v40  ;;  %v2064_v14 = vmul.f32 0.5, %v286_v7  ;;  %vm154_vm2 = vcmp.gt.f32.partialorder %v2044_v4, 0.0  ;;  %vm2143_vm4 = vmor %vm370_vm7, %vm371_vm9 }
  0xb9   :  { %v295_v52 = vmul.f32 %v2050_v35, %v1980_v48  ;;  %v333_v29 = vsel %vm332_vm15, %v1847_v37, %v329_v11  ;;  %v421_v50 = vsel %vm2558_vm1, %v2058_v28, -1e+30  ;;  %v417_v5 = vsel %vm2557_vm13, %v2061_v55, -1e+30 }
  0xba   :  { %v395_v18 = vmul.f32 %v1765_v8, %v333_v29  ;;  %v2077_v49 = vcvt.s32.f32 %v123_v42  ;;  %v288_v10 = vsub.f32 1.5, %v2064_v14  ;;  %vm291_vm10 = vweird.f32 %v2018_v23  ;;  %441 = vmax.xlane.f32.xlu1 %v421_v50  ;;  %433 = vmax.xlane.f32.xlu2 %v417_v5 }
  0xbb   :  { %v296_v63 = vmul.f32 %v2050_v35, %v295_v52  ;;  %v339_v37 = vmul.f32 %v1902_v41, %v338_v60  ;;  %v117_v12 = vunpack.c.1.s8 %v1823_v2  ;;  %v279_v60 = vmul.f32 %v1825_v6, %v278_v13 }
  0xbc   :  { %v2093_v11 = vmul.f32 %v1686_v19, %v395_v18  ;;  %vm155_vm15 = vcmp.gt.f32.partialorder %v2077_v49, 0.0  ;;  %v127_v42 = vunpack.c.3.s8 %v1739_v53  ;;  %vm260_vm14 = vweird.f32 %v1896_v3 }
  0xbd   :  { %vm261_vm13 = vweird.f32 %v1973_v31  ;;  %vm290_vm1 = vweird.f32 %v1949_v36  ;;  %v297_v19 = vmul.f32 0.5, %v296_v63  ;;  %v343_v47 = vsel %vm2088_vm11, %v1902_v41, %v339_v37  ;;  %vm252_vm11 = vmor %vm250_vm3, %vm251_vm8 }
  0xbe   :  { %v2114_v13 = vcvt.s32.f32 %v117_v12  ;;  %v379_v14 = vmul.f32 %v1914_v15, %v378_v9  ;;  %v427_v16 = vsel %vm154_vm2, %v2093_v11, -1e+30  ;;  %v396_v52 = vmul.f32 %v1765_v8, %v343_v47  ;;  %vm292_vm9 = vmor %vm290_vm1, %vm291_vm10 }
  0xbf   :  { %v283_v29 = vsel %vm2104_vm12, %v1825_v6, %v279_v60  ;;  %v2128_v41 = vcvt.s32.f32 %v127_v42  ;;  %v298_v50 = vsub.f32 1.5, %v297_v19  ;;  %453 = vmax.xlane.f32.xlu0 %v427_v16  ;;  %v114_v63 = vunpack.c.2.s8 %v1756_v62  ;;  %vm262_vm1 = vmor %vm260_vm14, %vm261_vm13  ;;  %v2580_v6 = vld [vmem:[#allocation18_spill] sm:$0xff] }
  0xc0   :  { %vm149_vm5 = vcmp.gt.f32.partialorder %v2114_v13, 0.0  ;;  %v390_v9 = vmul.f32 %v1765_v8, %v283_v29  ;;  %v383_v30 = vsel %vm382_vm0, %v1914_v15, %v379_v14  ;;  %v2134_v5 = vmul.f32 %v1696_v25, %v396_v52 }
  0xc1   :  { %vm159_vm6 = vcmp.gt.f32.partialorder %v2128_v41, 0.0  ;;  %v400_v18 = vmul.f32 %v1765_v8, %v383_v30  ;;  %v249_v25 = vmul.f32 %v1982_v43, %v248_v45  ;;  %v126_v15 = vunpack.c.2.s8 %v1739_v53 }
  0xc2   :  { %v2148_v37 = vmul.f32 %v1682_v17, %v390_v9  ;;  %v369_v12 = vmul.f32 %v1884_v22, %v368_v59  ;;  %v428_v21 = vsel %vm155_vm15, %v2134_v5, -1e+30  ;;  %v2165_v7 = vcvt.s32.f32 %v114_v63 }
  0xc3   :  { %v2163_v17 = vmul.f32 %v1698_v26, %v400_v18  ;;  %v118_v53 = vunpack.c.2.s8 %v1823_v2  ;;  %455 = vmax.xlane.f32.xlu1 %v428_v21  ;;  %v253_v59 = vsel %vm252_vm11, %v1982_v43, %v249_v25  ;;  %v2172_v40 = vcvt.s32.f32 %v126_v15 }
  0xc4   :  { %v422_v44 = vsel %vm149_vm5, %v2148_v37, -1e+30  ;;  %v373_v45 = vsel %vm2143_vm4, %v1884_v22, %v369_v12  ;;  %vm301_vm3 = vweird.f32 %v2050_v35  ;;  %v387_v60 = vmul.f32 %v1765_v8, %v253_v59 }
  0xc5   :  { %443 = vmax.xlane.f32.xlu2 %v422_v44  ;;  %v432_v26 = vsel %vm159_vm6, %v2163_v17, -1e+30  ;;  %v399_v42 = vmul.f32 %v1765_v8, %v373_v45  ;;  %vm146_vm7 = vcmp.gt.f32.partialorder %v2165_v7, 0.0  ;;  %v2184_v43 = vcvt.s32.f32 %v118_v53 }
  0xc6   :  { %v289_v27 = vmul.f32 %v2018_v23, %v288_v10  ;;  %v119_v19 = vunpack.c.3.s8 %v1823_v2  ;;  %vm300_vm8 = vweird.f32 %v1980_v48  ;;  %v2194_v22 = vmul.f32 %v1708_v33, %v387_v60 }
  0xc7   :  { %v299_v47 = vmul.f32 %v2050_v35, %v298_v50  ;;  %vm302_vm12 = vmor %vm300_vm8, %vm301_vm3  ;;  %463 = vmax.xlane.f32.xlu0 %v432_v26  ;;  %vm158_vm0 = vcmp.gt.f32.partialorder %v2172_v40, 0.0  ;;  %v2199_v10 = vmul.f32 %v1694_v24, %v399_v42  ;;  %v259_v36 = vmul.f32 %v1973_v31, %v258_v39  ;;  %v2581_v42 = vld [vmem:[#allocation16_spill] sm:$0xff] }
  0xc8   :  { %v293_v2 = vsel %vm292_vm9, %v2018_v23, %v289_v27  ;;  %v419_v33 = vsel %vm146_vm7, %v2194_v22, -1e+30  ;;  %v115_v14 = vunpack.c.3.s8 %v1756_v62  ;;  %vm150_vm10 = vcmp.gt.f32.partialorder %v2184_v43, 0.0 }
  0xc9   :  { %v391_v48 = vmul.f32 %v1765_v8, %v293_v2  ;;  %v303_v24 = vsel %vm302_vm12, %v2050_v35, %v299_v47  ;;  %v2216_v23 = vcvt.s32.f32 %v119_v19  ;;  %v263_v39 = vsel %vm262_vm1, %v1973_v31, %v259_v36  ;;  %v2583_v2 = vld [vmem:[#allocation17_spill] sm:$0xff] }
  0xca   :  { %v392_v20 = vmul.f32 %v1765_v8, %v303_v24  ;;  %v431_v16 = vsel %vm158_vm0, %v2199_v10, -1e+30  ;;  %v388_v35 = vmul.f32 %v1765_v8, %v263_v39  ;;  %v2233_v29 = vcvt.s32.f32 %v115_v14 }
  0xcb   :  { %v2221_v3 = vmul.f32 %v1710_v34, %v391_v48  ;;  %437 = vmax.xlane.f32.xlu1 %v419_v33  ;;  %vm151_vm13 = vcmp.gt.f32.partialorder %v2216_v23, 0.0  ;;  %vm2582_vm4 = vcmp.gt.f32.partialorder %v2581_v42, 0.0  ;;  %vm2584_vm11 = vcmp.gt.f32.partialorder %v2583_v2, 0.0  ;;  %v1214_v23 = vld [vmem:[#allocation11 + $0x30] sm:$0xff] }
  0xcc   :  { %v2231_v52 = vmul.f32 %v1718_v38, %v392_v20  ;;  %v2237_v34 = vmul.f32 %v1706_v32, %v388_v35  ;;  %vm147_vm14 = vcmp.gt.f32.partialorder %v2233_v29, 0.0  ;;  %vm2585_vm3 = vcmp.gt.f32.partialorder %v1817_v61, 0.0 }
  0xcd   :  { %461 = vmax.xlane.f32.xlu2 %v431_v16  ;;  %v423_v62 = vsel %vm150_vm10, %v2221_v3, -1e+30  ;;  %vm2586_vm9 = vcmp.gt.f32.partialorder %v1819_v0, 0.0  ;;  %vm2587_vm8 = vcmp.gt.f32.partialorder %v1821_v1, 0.0  ;;  %vm2588_vm12 = vcmp.gt.f32.partialorder %v1882_v54, 0.0 }
  0xce   :  { %v424_v31 = vsel %vm151_vm13, %v2231_v52, -1e+30  ;;  %v420_v38 = vsel %vm147_vm14, %v2237_v34, -1e+30  ;;  %vm2589_vm1 = vcmp.gt.f32.partialorder %v1804_v51, 0.0 }
  0xcf   :  { %445 = vmax.xlane.f32.xlu0 %v423_v62 }
  0xd3   :  { %447 = vmax.xlane.f32.xlu1 %v424_v31 }
  0xd5   :  { %439 = vmax.xlane.f32.xlu2 %v420_v38 }
 0x116   :  { %v450_v50 = vpop.xlane.xlu1 %449 }
 0x117   :  { %v2247_v9 = vmax.f32 %v450_v50, %v1765_v8 }
 0x118   :  { %v458_v30 = vpop.xlane.xlu0 %457 }
 0x119   :  { %v489_v32 = vsub.f32 %v1867_v57, %v2247_v9  ;;  %v2252_v18 = vmax.f32 %v458_v30, %v1765_v8  ;;  %v553_v43 = vsub.f32 %v1765_v8, %v2247_v9  ;;  %v1213_v9 = vld [vmem:[#allocation11 + $0x28] sm:$0xff] }
 0x11b   :  { %v513_v63 = vmul.f32 1.442695, %v489_v32  ;;  %v493_v25 = vsub.f32 %v2580_v6, %v2252_v18 }
 0x11d   :  { %1409 = vpow2.f32 %v513_v63  ;;  %v521_v15 = vmul.f32 1.442695, %v493_v25 }
 0x11f   :  { %1411 = vpow2.f32 %v521_v15 }
 0x123   :  { %v460_v12 = vpop.xlane.xlu1 %459  ;;  %v1410_v59 = vpop.eup %1409 }
 0x124   :  { %v2257_v21 = vmax.f32 %v460_v12, %v1765_v8  ;;  %v452_v44 = vpop.xlane.xlu2 %451  ;;  %v2269_v27 = vsel %vm2582_vm4, %v1410_v59, 0.0 }
 0x125   :  { %v436_v57 = vpop.xlane.xlu0 %435  ;;  %v2262_v45 = vmax.f32 %v452_v44, %v1765_v8  ;;  %v1412_v19 = vpop.eup %1411  ;;  %609 = vadd.xlane.f32.xlu2 %v2269_v27 }
 0x126   :  { %v494_v53 = vsub.f32 %v1966_v58, %v2257_v21  ;;  %v2265_v60 = vmax.f32 %v436_v57, %v1765_v8  ;;  %v2278_v36 = vsel %vm2584_vm11, %v1412_v19, 0.0  ;;  %v558_v29 = vsub.f32 %v1765_v8, %v2257_v21 }
 0x127   :  { %v490_v47 = vsub.f32 %v1991_v46, %v2262_v45  ;;  %617 = vadd.xlane.f32.xlu1 %v2278_v36 }
 0x128   :  { %v523_v26 = vmul.f32 1.442695, %v494_v53  ;;  %v482_v58 = vsub.f32 %v1999_v56, %v2265_v60 }
 0x129   :  { %v515_v33 = vmul.f32 1.442695, %v490_v47 }
 0x12a   :  { %1413 = vpow2.f32 %v523_v26  ;;  %v499_v48 = vmul.f32 1.442695, %v482_v58 }
 0x12b   :  { %1415 = vpow2.f32 %v515_v33 }
 0x12c   :  { %1417 = vpow2.f32 %v499_v48 }
 0x12d   :  { %v442_v24 = vpop.xlane.xlu1 %441  ;;  %v434_v46 = vpop.xlane.xlu2 %433 }
 0x12e   :  { %v2282_v14 = vmax.f32 %v442_v24, %v1765_v8  ;;  %v2285_v20 = vmax.f32 %v434_v46, %v1765_v8 }
 0x130   :  { %v1414_v39 = vpop.eup %1413  ;;  %v485_v56 = vsub.f32 %v2058_v28, %v2282_v14  ;;  %v481_v35 = vsub.f32 %v2061_v55, %v2285_v20 }
 0x131   :  { %v2293_v62 = vsel %vm2585_vm3, %v1414_v39, 0.0  ;;  %v1416_v50 = vpop.eup %1415 }
 0x132   :  { %v454_v16 = vpop.xlane.xlu0 %453  ;;  %v505_v31 = vmul.f32 1.442695, %v485_v56  ;;  %619 = vadd.xlane.f32.xlu2 %v2293_v62  ;;  %v497_v30 = vmul.f32 1.442695, %v481_v35  ;;  %v1418_v32 = vpop.eup %1417  ;;  %v2303_v55 = vsel %vm2586_vm9, %v1416_v50, 0.0 }
 0x133   :  { %v2296_v38 = vmax.f32 %v454_v16, %v1765_v8  ;;  %v2307_v61 = vsel %vm2587_vm8, %v1418_v32, 0.0  ;;  %611 = vadd.xlane.f32.xlu0 %v2303_v55 }
 0x134   :  { %1419 = vpow2.f32 %v505_v31  ;;  %595 = vadd.xlane.f32.xlu1 %v2307_v61 }
 0x135   :  { %v491_v28 = vsub.f32 %v2093_v11, %v2296_v38  ;;  %1421 = vpow2.f32 %v497_v30 }
 0x136   :  { %v456_v63 = vpop.xlane.xlu1 %455 }
 0x137   :  { %v517_v6 = vmul.f32 1.442695, %v491_v28  ;;  %v2312_v25 = vmax.f32 %v456_v63, %v1765_v8 }
 0x138   :  { %v444_v15 = vpop.xlane.xlu2 %443 }
 0x139   :  { %v2315_v11 = vmax.f32 %v444_v15, %v1765_v8  ;;  %1423 = vpow2.f32 %v517_v6  ;;  %v492_v0 = vsub.f32 %v2134_v5, %v2312_v25 }
 0x13a   :  { %v464_v1 = vpop.xlane.xlu0 %463  ;;  %v1420_v53 = vpop.eup %1419 }
 0x13b   :  { %v486_v12 = vsub.f32 %v2148_v37, %v2315_v11  ;;  %v519_v44 = vmul.f32 1.442695, %v492_v0  ;;  %v2322_v59 = vmax.f32 %v464_v1, %v1765_v8  ;;  %v2326_v26 = vsel %vm2588_vm12, %v1420_v53, 0.0  ;;  %v1422_v42 = vpop.eup %1421 }
 0x13c   :  { %601 = vadd.xlane.f32.xlu2 %v2326_v26  ;;  %v2333_v5 = vsel %vm2589_vm1, %v1422_v42, 0.0  ;;  %v557_v42 = vsub.f32 %v1765_v8, %v2252_v18  ;;  %v546_v18 = vsub.f32 %v1765_v8, %v2265_v60 }
 0x13d   :  { %v507_v57 = vmul.f32 1.442695, %v486_v12  ;;  %1425 = vpow2.f32 %v519_v44  ;;  %v496_v19 = vsub.f32 %v2163_v17, %v2322_v59  ;;  %593 = vadd.xlane.f32.xlu0 %v2333_v5 }
 0x13e   :  { %v438_v37 = vpop.xlane.xlu1 %437 }
 0x13f   :  { %v1424_v47 = vpop.eup %1423  ;;  %v527_v58 = vmul.f32 1.442695, %v496_v19  ;;  %1427 = vpow2.f32 %v507_v57  ;;  %v2337_v54 = vmax.f32 %v438_v37, %v1765_v8  ;;  %v1215_v57 = vld [vmem:[#allocation11 + $0x38] sm:$0xff]  ;;  %v577_v19 = vmul.f32 1.442695, %v553_v43 }
 0x140   :  { %v462_v2 = vpop.xlane.xlu2 %461  ;;  %v2341_v33 = vsel %vm154_vm2, %v1424_v47, 0.0  ;;  %1342 = vmatpush.bf16.msra.mxu2 %v1215_v57  ;;  %1343 = vmatpush.bf16.msra.mxu3 %v1215_v57  ;;  %v585_v37 = vmul.f32 1.442695, %v557_v42  ;;  %v554_v47 = vsub.f32 %v1765_v8, %v2262_v45  ;;  %v549_v45 = vsub.f32 %v1765_v8, %v2282_v14 }
 0x141   :  { %v2344_v17 = vmax.f32 %v462_v2, %v1765_v8  ;;  %1429 = vpow2.f32 %v527_v58  ;;  %613 = vadd.xlane.f32.xlu1 %v2341_v33  ;;  %v483_v51 = vsub.f32 %v2194_v22, %v2337_v54  ;;  %1049 = vmatpush.bf16.msra.mxu0 %v1215_v57  ;;  %v1212_v58 = vld [vmem:[#allocation11 + $0x20] sm:$0xff]  ;;  %v587_v2 = vmul.f32 1.442695, %v558_v29 }
 0x142   :  { %v446_v48 = vpop.xlane.xlu0 %445  ;;  %1341 = vmatpush.bf16.msra.mxu1 %v1215_v57  ;;  %v569_v14 = vmul.f32 1.442695, %v549_v45  ;;  %vm755_vm2 = vcmask 7168   ;;  %v547_v45 = vsub.f32 %v1765_v8, %v2337_v54 }
 0x143   :  { %v495_v24 = vsub.f32 %v2199_v10, %v2344_v17  ;;  %v1426_v46 = vpop.eup %1425  ;;  %v501_v39 = vmul.f32 1.442695, %v483_v51  ;;  %v2352_v56 = vmax.f32 %v446_v48, %v1765_v8  ;;  %v563_v48 = vmul.f32 1.442695, %v546_v18 }
 0x144   :  { %v2356_v16 = vsel %vm155_vm15, %v1426_v46, 0.0  ;;  %1345 = vmatpush.bf16.msra.mxu2 %v1214_v23  ;;  %1346 = vmatpush.bf16.msra.mxu3 %v1214_v23 }
 0x145   :  { %v525_v4 = vmul.f32 1.442695, %v495_v24  ;;  %v1428_v35 = vpop.eup %1427  ;;  %1431 = vpow2.f32 %v501_v39  ;;  %v487_v31 = vsub.f32 %v2221_v3, %v2352_v56  ;;  %615 = vadd.xlane.f32.xlu2 %v2356_v16  ;;  %1050 = vmatpush.bf16.msra.mxu0 %v1214_v23  ;;  %v579_v39 = vmul.f32 1.442695, %v554_v47 }
 0x146   :  { %v2363_v22 = vsel %vm149_vm5, %v1428_v35, 0.0  ;;  %v448_v10 = vpop.xlane.xlu1 %447  ;;  %1344 = vmatpush.bf16.msra.mxu1 %v1214_v23  ;;  %v560_v47 = vsub.f32 %v1765_v8, %v2322_v59 }
 0x147   :  { %v1430_v50 = vpop.eup %1429  ;;  %v509_v30 = vmul.f32 1.442695, %v487_v31  ;;  %1433 = vpow2.f32 %v525_v4  ;;  %603 = vadd.xlane.f32.xlu0 %v2363_v22  ;;  %v2367_v49 = vmax.f32 %v448_v10, %v1765_v8  ;;  %v1211_v31 = vld [vmem:[#allocation11 + $0x18] sm:$0xff]  ;;  %v545_v10 = vsub.f32 %v1765_v8, %v2285_v20 }
 0x148   :  { %v440_v32 = vpop.xlane.xlu2 %439  ;;  %v2371_v28 = vsel %vm159_vm6, %v1430_v50, 0.0  ;;  %1348 = vmatpush.bf16.msra.mxu2 %v1213_v9  ;;  %1349 = vmatpush.bf16.msra.mxu3 %v1213_v9 }
 0x149   :  { %v2374_v3 = vmax.f32 %v440_v32, %v1765_v8  ;;  %1435 = vpow2.f32 %v509_v30  ;;  %623 = vadd.xlane.f32.xlu1 %v2371_v28  ;;  %v488_v13 = vsub.f32 %v2231_v52, %v2367_v49  ;;  %1051 = vmatpush.bf16.msra.mxu0 %v1213_v9  ;;  %v555_v30 = vsub.f32 %v1765_v8, %v2296_v38  ;;  %v1210_v32 = vld [vmem:[#allocation11 + $0x10] sm:$0xff] }
 0x14a   :  { %1347 = vmatpush.bf16.msra.mxu1 %v1213_v9  ;;  %v561_v20 = vmul.f32 1.442695, %v545_v10 }
 0x14b   :  { %v484_v63 = vsub.f32 %v2237_v34, %v2374_v3  ;;  %v1432_v6 = vpop.eup %1431  ;;  %v511_v15 = vmul.f32 1.442695, %v488_v13 }
 0x14c   :  { %v2383_v41 = vsel %vm146_vm7, %v1432_v6, 0.0  ;;  %1351 = vmatpush.bf16.msra.mxu2 %v1212_v58  ;;  %1352 = vmatpush.bf16.msra.mxu3 %v1212_v58 }
 0x14d   :  { %v503_v0 = vmul.f32 1.442695, %v484_v63  ;;  %v1434_v1 = vpop.eup %1433  ;;  %1437 = vpow2.f32 %v511_v15  ;;  %597 = vadd.xlane.f32.xlu2 %v2383_v41  ;;  %1052 = vmatpush.bf16.msra.mxu0 %v1212_v58  ;;  %v581_v15 = vmul.f32 1.442695, %v555_v30 }
 0x14e   :  { %v2388_v12 = vsel %vm158_vm0, %v1434_v1, 0.0  ;;  %1350 = vmatpush.bf16.msra.mxu1 %v1212_v58  ;;  %v2430_v1 = vstv %s721_s12 }
 0x14f   :  { %v1436_v53 = vpop.eup %1435  ;;  %1439 = vpow2.f32 %v503_v0  ;;  %621 = vadd.xlane.f32.xlu0 %v2388_v12 }
 0x150   :  { %v2393_v52 = vsel %vm150_vm10, %v1436_v53, 0.0  ;;  %1441 = vpow2.f32 %v577_v19  ;;  %1354 = vmatpush.bf16.msra.mxu2 %v1211_v31  ;;  %1355 = vmatpush.bf16.msra.mxu3 %v1211_v31  ;;  %v1209_v53 = vld [vmem:[#allocation11 + $0x8] sm:$0xff]  ;;  %v550_v19 = vsub.f32 %v1765_v8, %v2315_v11 }
 0x151   :  { %605 = vadd.xlane.f32.xlu1 %v2393_v52  ;;  %1443 = vpow2.f32 %v585_v37  ;;  %1053 = vmatpush.bf16.msra.mxu0 %v1211_v31 }
 0x152   :  { %1445 = vpow2.f32 %v587_v2  ;;  %1353 = vmatpush.bf16.msra.mxu1 %v1211_v31  ;;  %v1208_v2 = vld [vmem:[#allocation11] sm:$0xff] }
 0x153   :  { %v1438_v7 = vpop.eup %1437  ;;  %1447 = vpow2.f32 %v563_v48 }
 0x154   :  { %v2398_v34 = vsel %vm151_vm13, %v1438_v7, 0.0  ;;  %1357 = vmatpush.bf16.msra.mxu2 %v1210_v32  ;;  %1358 = vmatpush.bf16.msra.mxu3 %v1210_v32 }
 0x155   :  { %v1440_v44 = vpop.eup %1439  ;;  %607 = vadd.xlane.f32.xlu2 %v2398_v34  ;;  %1054 = vmatpush.bf16.msra.mxu0 %v1210_v32 }
 0x156   :  { %v2403_v40 = vsel %vm147_vm14, %v1440_v44, 0.0  ;;  %v1442_v51 = vpop.eup %1441  ;;  %1356 = vmatpush.bf16.msra.mxu1 %v1210_v32  ;;  %v556_v44 = vsub.f32 %v1765_v8, %v2312_v25 }
 0x157   :  { %599 = vadd.xlane.f32.xlu0 %v2403_v40  ;;  %v1444_v21 = vpop.eup %1443 }
 0x158   :  { %v2425_v13 = vpop.eup %1445  ;;  %1360 = vmatpush.bf16.msra.mxu2 %v1209_v53  ;;  %1361 = vmatpush.bf16.msra.mxu3 %v1209_v53  ;;  %v583_v11 = vmul.f32 1.442695, %v556_v44 }
 0x159   :  { %v2427_v6 = vpop.eup %1447  ;;  %1055 = vmatpush.bf16.msra.mxu0 %v1209_v53 }
 0x15a   :  { %1359 = vmatpush.bf16.msra.mxu1 %v1209_v53 }
 0x15c   :  { %1363 = vmatpush.bf16.msra.mxu2 %v1208_v2  ;;  %1364 = vmatpush.bf16.msra.mxu3 %v1208_v2 }
 0x15d   :  { %1056 = vmatpush.bf16.msra.mxu0 %v1208_v2 }
 0x15e   :  { %1362 = vmatpush.bf16.msra.mxu1 %v1208_v2 }
 0x198   :  { %v610_v24 = vpop.xlane.xlu2 %609 }
 0x199   :  { %v633_v46 = vadd.f32 %v1442_v51, %v610_v24  ;;  %v571_v24 = vmul.f32 1.442695, %v550_v19 }
 0x19a   :  { %v618_v4 = vpop.xlane.xlu1 %617 }
 0x19b   :  { %v637_v60 = vadd.f32 %v1444_v21, %v618_v4  ;;  %v649_v35 = vadd.f32 1e-16, %v633_v46  ;;  %v1614_v46 = vmov 0  }
 0x19c   :  { %1375 = vset.pattern.permute.xlu1 %v1614_v46  ;;  %1374 = vset.pattern.permute.xlu0 %v1614_v46 }
 0x19d   :  { %v653_v50 = vadd.f32 1e-16, %v637_v60  ;;  %1449 = vrcp.f32 %v649_v35  ;;  %1376 = vset.pattern.permute.xlu2 %v1614_v46 }
 0x19e   :  { %1451 = vpow2.f32 %v579_v39  ;;  %v591_v39 = vmul.f32 1.442695, %v560_v47  ;;  %v548_v47 = vsub.f32 %v1765_v8, %v2374_v3 }
 0x19f   :  { %1453 = vrcp.f32 %v653_v50 }
 0x1a0   :  { %1455 = vpow2.f32 %v569_v14 }
 0x1a1   :  { %1457 = vpow2.f32 %v561_v20 }
 0x1a2   :  { %1459 = vpow2.f32 %v581_v15  ;;  %v559_v15 = vsub.f32 %v1765_v8, %v2344_v17 }
 0x1a3   :  { %v1450_v0 = vpop.eup %1449 }
 0x1a4   :  { %v2432_v7 = vpop.eup %1451  ;;  %v730_v43 = vmul.f32 %v1450_v0, %v1442_v51 }
 0x1a5   :  { %v620_v63 = vpop.xlane.xlu2 %619  ;;  %v1454_v23 = vpop.eup %1453 }
 0x1a6   :  { %v638_v38 = vadd.f32 %v2425_v13, %v620_v63  ;;  %v612_v57 = vpop.xlane.xlu0 %611  ;;  %v734_v9 = vmul.f32 %v1454_v23, %v1444_v21  ;;  %v747_v18 = vadd.f32 %v2430_v1, %v730_v43  ;;  %v2445_v21 = vpop.eup %1455  ;;  %v685_v10 = vmul.f32 %v1454_v23, %v2278_v36 }
 0x1a7   :  { %v596_v37 = vpop.xlane.xlu1 %595  ;;  %v634_v29 = vadd.f32 %v2432_v7, %v612_v57  ;;  %v2448_v59 = vpop.eup %1457 }
 0x1a8   :  { %v654_v42 = vadd.f32 1e-16, %v638_v38  ;;  %v626_v25 = vadd.f32 %v2427_v6, %v596_v37  ;;  %v751_v51 = vadd.f32 %v2430_v1, %v734_v9  ;;  %764 = vst.msk [vmem:[#allocation3 + $0x40] sm:$0xff] %vm755_vm2, %v747_v18  ;;  %v2450_v60 = vpop.eup %1459  ;;  %v681_v38 = vmul.f32 %v1450_v0, %v2269_v27 }
 0x1a9   :  { %v650_v58 = vadd.f32 1e-16, %v634_v29  ;;  %v565_v27 = vmul.f32 1.442695, %v547_v45  ;;  %v552_v29 = vsub.f32 %v1765_v8, %v2367_v49 }
 0x1aa   :  { %1461 = vrcp.f32 %v654_v42  ;;  %v642_v48 = vadd.f32 1e-16, %v626_v25  ;;  %768 = vst.msk [vmem:[#allocation3 + $0x60] sm:$0xff] %vm755_vm2, %v751_v51 }
 0x1ab   :  { %1463 = vrcp.f32 %v650_v58 }
 0x1ac   :  { %1465 = vrcp.f32 %v642_v48  ;;  %v575_v48 = vmul.f32 1.442695, %v552_v29 }
 0x1ad   :  { %1467 = vpow2.f32 %v583_v11 }
 0x1ae   :  { %1469 = vpow2.f32 %v571_v24 }
 0x1af   :  { %v602_v4 = vpop.xlane.xlu2 %601  ;;  %1471 = vpow2.f32 %v591_v39 }
 0x1b0   :  { %v629_v35 = vadd.f32 %v2445_v21, %v602_v4  ;;  %v1462_v31 = vpop.eup %1461  ;;  %v594_v50 = vpop.xlane.xlu0 %593 }
 0x1b1   :  { %v686_v30 = vmul.f32 %v1462_v31, %v2293_v62  ;;  %v735_v32 = vmul.f32 %v1462_v31, %v2425_v13  ;;  %v625_v14 = vadd.f32 %v2448_v59, %v594_v50  ;;  %v1464_v63 = vpop.eup %1463  ;;  %v551_v13 = vsub.f32 %v1765_v8, %v2352_v56 }
 0x1b2   :  { %v645_v20 = vadd.f32 1e-16, %v629_v35  ;;  %v1466_v44 = vpop.eup %1465  ;;  %v682_v54 = vmul.f32 %v1464_v63, %v2303_v55  ;;  %v731_v36 = vmul.f32 %v1464_v63, %v2432_v7  ;;  %v589_v7 = vmul.f32 1.442695, %v559_v15 }
 0x1b3   :  { %v1281_v43 = vpack.c.bf16 %v686_v30, %v685_v10  ;;  %v752_v62 = vadd.f32 %v2430_v1, %v735_v32  ;;  %v723_v57 = vmul.f32 %v1466_v44, %v2427_v6  ;;  %v641_v23 = vadd.f32 1e-16, %v625_v14  ;;  %v2469_v17 = vpop.eup %1467 }
 0x1b4   :  { %v614_v53 = vpop.xlane.xlu1 %613  ;;  %v1271_v0 = vpack.c.bf16 %v682_v54, %v681_v38  ;;  %v748_v19 = vadd.f32 %v2430_v1, %v731_v36  ;;  %1473 = vrcp.f32 %v645_v20  ;;  %v2472_v55 = vpop.eup %1469  ;;  %v573_v25 = vmul.f32 1.442695, %v551_v13 }
 0x1b5   :  { %v635_v42 = vadd.f32 %v2450_v60, %v614_v53  ;;  %1332 = vst [vmem:[#allocation2 + $0x28] sm:$0xff] %v1281_v43   ;;  %v740_v37 = vadd.f32 %v2430_v1, %v723_v57  ;;  %1475 = vrcp.f32 %v641_v23  ;;  %v2479_v18 = vpop.eup %1471  ;;  %v567_v8 = vmul.f32 1.442695, %v548_v47 }
 0x1b6   :  { %769 = vst.msk [vmem:[#allocation3 + $0x68] sm:$0xff] %vm755_vm2, %v752_v62  ;;  %v674_v3 = vmul.f32 %v1466_v44, %v2307_v61 }
 0x1b7   :  { %v651_v56 = vadd.f32 1e-16, %v635_v42  ;;  %1330 = vst [vmem:[#allocation2 + $0x8] sm:$0xff] %v1271_v0  }
 0x1b8   :  { %v616_v6 = vpop.xlane.xlu2 %615  ;;  %757 = vst.msk [vmem:[#allocation3 + $0x8] sm:$0xff] %vm755_vm2, %v740_v37 }
 0x1b9   :  { %v636_v9 = vadd.f32 %v2469_v17, %v616_v6  ;;  %1477 = vrcp.f32 %v651_v56  ;;  %765 = vst.msk [vmem:[#allocation3 + $0x48] sm:$0xff] %vm755_vm2, %v748_v19 }
 0x1ba   :  { %v604_v58 = vpop.xlane.xlu0 %603  ;;  %1479 = vpow2.f32 %v565_v27  ;;  %v1474_v51 = vpop.eup %1473 }
 0x1bb   :  { %v630_v2 = vadd.f32 %v2472_v55, %v604_v58  ;;  %v652_v11 = vadd.f32 1e-16, %v636_v9  ;;  %1481 = vpow2.f32 %v589_v7  ;;  %v1476_v39 = vpop.eup %1475  ;;  %v726_v4 = vmul.f32 %v1474_v51, %v2445_v21 }
 0x1bc   :  { %v624_v49 = vpop.xlane.xlu1 %623  ;;  %v1206_v35 = vld [vmem:[#allocation2 + $0x28] sm:$0xff]  ;;  %v673_v31 = vmul.f32 %v1476_v39, %v2333_v5  ;;  %v722_v45 = vmul.f32 %v1476_v39, %v2448_v59  ;;  %v677_v23 = vmul.f32 %v1474_v51, %v2326_v26 }
 0x1bd   :  { %v640_v24 = vadd.f32 %v2479_v18, %v624_v49  ;;  %v646_v46 = vadd.f32 1e-16, %v630_v2  ;;  %1483 = vrcp.f32 %v652_v11  ;;  %v743_v30 = vadd.f32 %v2430_v1, %v726_v4  ;;  %1087 = vmatmul.bf16.vlgmr.msra.gmra.mxu3 %v1206_v35 }
 0x1be   :  { %1485 = vpow2.f32 %v573_v25  ;;  %v1204_v14 = vld [vmem:[#allocation2 + $0x8] sm:$0xff]  ;;  %v1251_v63 = vpack.c.bf16 %v674_v3, %v673_v31  ;;  %v739_v21 = vadd.f32 %v2430_v1, %v722_v45 }
 0x1bf   :  { %v656_v10 = vadd.f32 1e-16, %v640_v24  ;;  %1487 = vrcp.f32 %v646_v46  ;;  %v1478_v50 = vpop.eup %1477  ;;  %v842_v15 = vld [vmem:[#allocation3 + $0x8] sm:$0xff]  ;;  %760 = vst.msk [vmem:[#allocation3 + $0x20] sm:$0xff] %vm755_vm2, %v743_v30  ;;  %1077 = vmatmul.bf16.vlgmr.msra.gmra.mxu2 %v1204_v14 }
 0x1c0   :  { %v598_v32 = vpop.xlane.xlu2 %597  ;;  %v2492_v20 = vpop.eup %1479  ;;  %1489 = vpow2.f32 %v575_v48  ;;  %v732_v61 = vmul.f32 %v1478_v50, %v2450_v60  ;;  %864 = vperm.xlu1 %1375, %v842_v15   ;;  %1252 = vst [vmem:[#allocation2 + $0x30] sm:$0xff] %v1251_v63   ;;  %v683_v36 = vmul.f32 %v1478_v50, %v2341_v33 }
 0x1c1   :  { %v1482_v5 = vpop.eup %1481  ;;  %1491 = vrcp.f32 %v656_v10  ;;  %v627_v38 = vadd.f32 %v2492_v20, %v598_v32  ;;  %756 = vst.msk [vmem:[#allocation3] sm:$0xff] %vm755_vm2, %v739_v21 }
 0x1c2   :  { %v622_v59 = vpop.xlane.xlu0 %621  ;;  %1493 = vpow2.f32 %v567_v8  ;;  %v749_v44 = vadd.f32 %v2430_v1, %v732_v61 }
 0x1c3   :  { %v1484_v53 = vpop.eup %1483  ;;  %v639_v54 = vadd.f32 %v1482_v5, %v622_v59  ;;  %v643_v57 = vadd.f32 1e-16, %v627_v38 }
 0x1c4   :  { %v1486_v60 = vpop.eup %1485  ;;  %v684_v43 = vmul.f32 %v1484_v53, %v2356_v16  ;;  %v733_v62 = vmul.f32 %v1484_v53, %v2469_v17  ;;  %v606_v13 = vpop.xlane.xlu1 %605  ;;  %766 = vst.msk [vmem:[#allocation3 + $0x50] sm:$0xff] %vm755_vm2, %v749_v44 }
 0x1c5   :  { %v1488_v42 = vpop.eup %1487  ;;  %v631_v27 = vadd.f32 %v1486_v60, %v606_v13  ;;  %v655_v0 = vadd.f32 1e-16, %v639_v54  ;;  %v854_v13 = vld [vmem:[#allocation3 + $0x68] sm:$0xff] }
 0x1c6   :  { %v678_v19 = vmul.f32 %v1488_v42, %v2363_v22  ;;  %v727_v7 = vmul.f32 %v1488_v42, %v2472_v55  ;;  %v1276_v33 = vpack.c.bf16 %v684_v43, %v683_v36  ;;  %v750_v37 = vadd.f32 %v2430_v1, %v733_v62  ;;  %v1490_v56 = vpop.eup %1489  ;;  %v845_v22 = vld [vmem:[#allocation3 + $0x20] sm:$0xff]  ;;  %v850_v36 = vld [vmem:[#allocation3 + $0x48] sm:$0xff] }
 0x1c7   :  { %v647_v16 = vadd.f32 1e-16, %v631_v27  ;;  %1495 = vrcp.f32 %v655_v0  ;;  %v1492_v17 = vpop.eup %1491  ;;  %v1200_v58 = vld [vmem:[#allocation2 + $0x30] sm:$0xff]  ;;  %v853_v43 = vld [vmem:[#allocation3 + $0x60] sm:$0xff] }
 0x1c8   :  { %v1261_v6 = vpack.c.bf16 %v678_v19, %v677_v23  ;;  %v744_v29 = vadd.f32 %v2430_v1, %v727_v7  ;;  %1331 = vst [vmem:[#allocation2 + $0x20] sm:$0xff] %v1276_v33   ;;  %1497 = vrcp.f32 %v643_v57  ;;  %v608_v9 = vpop.xlane.xlu2 %607  ;;  %v1494_v26 = vpop.eup %1493  ;;  %v737_v25 = vmul.f32 %v1492_v17, %v2479_v18  ;;  %879 = vperm.xlu1 %1375, %v845_v22   ;;  %v841_v11 = vld [vmem:[#allocation3] sm:$0xff] }
 0x1c9   :  { %767 = vst.msk [vmem:[#allocation3 + $0x58] sm:$0xff] %vm755_vm2, %v750_v37  ;;  %1499 = vrcp.f32 %v647_v16  ;;  %v632_v55 = vadd.f32 %v1490_v56, %v608_v9  ;;  %859 = vperm.xlu0 %1374, %v841_v11   ;;  %1057 = vmatmul.bf16.vlgmr.msra.gmra.mxu0 %v1200_v58  ;;  %v688_v46 = vmul.f32 %v1492_v17, %v2371_v28  ;;  %v849_v42 = vld [vmem:[#allocation3 + $0x40] sm:$0xff]  ;;  %v1335_v9 = vld [vmem:[#allocation11 + $0x10] sm:$0xff]  }
 0x1ca   :  { %1328 = vst [vmem:[#allocation2 + $0x18] sm:$0xff] %v1261_v6   ;;  %v600_v47 = vpop.xlane.xlu0 %599  ;;  %v754_v2 = vadd.f32 %v2430_v1, %v737_v25  ;;  %v1289_v33 = vld [vmem:[#allocation11] sm:$0xff]  }
 0x1cb   :  { %761 = vst.msk [vmem:[#allocation3 + $0x28] sm:$0xff] %vm755_vm2, %v744_v29  ;;  %v628_v49 = vadd.f32 %v1494_v26, %v600_v47  ;;  %v648_v51 = vadd.f32 1e-16, %v632_v55  ;;  %v1290_v37 = vunpack.c.l.bf16 %v1289_v33  ;;  %v1337_v25 = vld [vmem:[#allocation11 + $0x20] sm:$0xff]   ;;  %v1298_v55 = vunpack.c.l.bf16 %v1335_v9 }
 0x1cc   :  { %771 = vst.msk [vmem:[#allocation3 + $0x78] sm:$0xff] %vm755_vm2, %v754_v2  ;;  %v1291_v47 = vunpack.c.h.bf16 %v1289_v33  ;;  %v1306_v2 = vunpack.c.l.bf16 %v1337_v25 }
 0x1cd   :  { %v1496_v48 = vpop.eup %1495  ;;  %v644_v18 = vadd.f32 1e-16, %v628_v49  ;;  %1501 = vrcp.f32 %v648_v51 }
 0x1ce   :  { %v1498_v24 = vpop.eup %1497  ;;  %v687_v39 = vmul.f32 %v1496_v48, %v2388_v12  ;;  %v736_v8 = vmul.f32 %v1496_v48, %v1482_v5 }
 0x1cf   :  { %v1500_v3 = vpop.eup %1499  ;;  %v724_v4 = vmul.f32 %v1498_v24, %v2492_v20  ;;  %1503 = vrcp.f32 %v644_v18  ;;  %v1205_v35 = vld [vmem:[#allocation2 + $0x20] sm:$0xff]  ;;  %v675_v63 = vmul.f32 %v1498_v24, %v2383_v41 }
 0x1d0   :  { %v728_v31 = vmul.f32 %v1500_v3, %v1486_v60  ;;  %v1286_v45 = vpack.c.bf16 %v688_v46, %v687_v39  ;;  %v753_v10 = vadd.f32 %v2430_v1, %v736_v8  ;;  %1082 = vmatmul.bf16.gmra.mxu2 %v1205_v35  ;;  %v679_v12 = vmul.f32 %v1500_v3, %v2393_v52  ;;  %v852_v23 = vld [vmem:[#allocation3 + $0x58] sm:$0xff] }
 0x1d1   :  { %v741_v50 = vadd.f32 %v2430_v1, %v724_v4  ;;  %v1202_v30 = vld [vmem:[#allocation2 + $0x18] sm:$0xff]  ;;  %v1299_v35 = vunpack.c.h.bf16 %v1335_v9 }
 0x1d2   :  { %v745_v32 = vadd.f32 %v2430_v1, %v728_v31  ;;  %1333 = vst [vmem:[#allocation2 + $0x38] sm:$0xff] %v1286_v45   ;;  %1067 = vmatmul.bf16.vlgmr.msra.gmra.mxu1 %v1202_v30  ;;  %v846_v62 = vld [vmem:[#allocation3 + $0x28] sm:$0xff]  ;;  %v1307_v31 = vunpack.c.h.bf16 %v1337_v25 }
 0x1d3   :  { %v1502_v28 = vpop.eup %1501  ;;  %770 = vst.msk [vmem:[#allocation3 + $0x70] sm:$0xff] %vm755_vm2, %v753_v10  ;;  %v856_v57 = vld [vmem:[#allocation3 + $0x78] sm:$0xff]  ;;  %v1338_v10 = vld [vmem:[#allocation11 + $0x28] sm:$0xff]  }
 0x1d4   :  { %762 = vst.msk [vmem:[#allocation3 + $0x30] sm:$0xff] %vm755_vm2, %v745_v32  ;;  %v680_v14 = vmul.f32 %v1502_v28, %v2398_v34  ;;  %v729_v20 = vmul.f32 %v1502_v28, %v1490_v56 }
 0x1d5   :  { %v1504_v61 = vpop.eup %1503  ;;  %758 = vst.msk [vmem:[#allocation3 + $0x10] sm:$0xff] %vm755_vm2, %v741_v50 }
 0x1d6   :  { %v676_v21 = vmul.f32 %v1504_v61, %v2403_v40  ;;  %v725_v15 = vmul.f32 %v1504_v61, %v1494_v26  ;;  %v1266_v5 = vpack.c.bf16 %v680_v14, %v679_v12  ;;  %v746_v59 = vadd.f32 %v2430_v1, %v729_v20  ;;  %v1334_v20 = vld [vmem:[#allocation11 + $0x8] sm:$0xff]  }
 0x1d7   :  { %v1311_v61 = vunpack.c.h.bf16 %v1338_v10  ;;  %v1295_v9 = vunpack.c.h.bf16 %v1334_v20 }
 0x1d8   :  { %v1256_v38 = vpack.c.bf16 %v676_v21, %v675_v63  ;;  %v742_v53 = vadd.f32 %v2430_v1, %v725_v15  ;;  %1329 = vst [vmem:[#allocation2 + $0x10] sm:$0xff] %v1266_v5   ;;  %v851_v1 = vld [vmem:[#allocation3 + $0x50] sm:$0xff]  ;;  %v1310_v15 = vunpack.c.l.bf16 %v1338_v10  ;;  %v1336_v5 = vld [vmem:[#allocation11 + $0x18] sm:$0xff]  }
 0x1d9   :  { %763 = vst.msk [vmem:[#allocation3 + $0x38] sm:$0xff] %vm755_vm2, %v746_v59  ;;  %v1207_v52 = vld [vmem:[#allocation2 + $0x38] sm:$0xff]  ;;  %v1339_v21 = vld [vmem:[#allocation11 + $0x30] sm:$0xff]  }
 0x1da   :  { %1327 = vst [vmem:[#allocation2] sm:$0xff] %v1256_v38   ;;  %1092 = vmatmul.bf16.gmra.mxu3 %v1207_v52  ;;  %v855_v27 = vld [vmem:[#allocation3 + $0x70] sm:$0xff]  ;;  %v1294_v52 = vunpack.c.l.bf16 %v1334_v20 }
 0x1db   :  { %759 = vst.msk [vmem:[#allocation3 + $0x18] sm:$0xff] %vm755_vm2, %v742_v53  ;;  %v847_v34 = vld [vmem:[#allocation3 + $0x30] sm:$0xff]  ;;  %v1340_v53 = vld [vmem:[#allocation11 + $0x38] sm:$0xff]  }
 0x1dc   :  { %889 = vperm.xlu1 %1375, %v847_v34   ;;  %v843_v41 = vld [vmem:[#allocation3 + $0x10] sm:$0xff]  ;;  %v1314_v34 = vunpack.c.l.bf16 %v1339_v21  ;;  %v1319_v25 = vunpack.c.h.bf16 %v1340_v53 }
 0x1dd   :  { %869 = vperm.xlu2 %1376, %v843_v41  }
 0x1df   :  { %v1203_v40 = vld [vmem:[#allocation2 + $0x10] sm:$0xff] }
 0x1e0   :  { %v848_v44 = vld [vmem:[#allocation3 + $0x38] sm:$0xff] }
 0x1e1   :  { %894 = vperm.xlu0 %1374, %v848_v44   ;;  %v1201_v54 = vld [vmem:[#allocation2] sm:$0xff] }
 0x1e2   :  { %v844_v60 = vld [vmem:[#allocation3 + $0x18] sm:$0xff]  ;;  %1062 = vmatmul.bf16.gmra.mxu0 %v1201_v54  ;;  %1072 = vmatmul.bf16.gmra.mxu1 %v1203_v40  ;;  %v1302_v40 = vunpack.c.l.bf16 %v1336_v5 }
 0x1e4   :  { %904 = vperm.xlu1 %1375, %v850_v36  }
 0x1e5   :  { %874 = vperm.xlu2 %1376, %v844_v60   ;;  %v1318_v60 = vunpack.c.l.bf16 %v1340_v53 }
 0x1e9   :  { %909 = vperm.xlu0 %1374, %v851_v1  }
 0x1ec   :  { %919 = vperm.xlu1 %1375, %v853_v43  }
 0x1ed   :  { %884 = vperm.xlu2 %1376, %v846_v62  }
 0x1f1   :  { %924 = vperm.xlu0 %1374, %v854_v13  }
 0x1f4   :  { %934 = vperm.xlu1 %1375, %v856_v57  }
 0x1f5   :  { %899 = vperm.xlu2 %1376, %v849_v42  }
 0x1fd   :  { %914 = vperm.xlu2 %1376, %v852_v23  }
 0x205   :  { %929 = vperm.xlu2 %1376, %v855_v27  }
 0x232   :  { %v865_v19 = vpop.permute.xlu1 %864 }
 0x233   :  { %v938_v18 = vmul.f32 %v1291_v47, %v865_v19 }
 0x237   :  { %v2531_v0 = vpop.permute.xlu2 %869 }
 0x238   :  { %v939_v57 = vmul.f32 %v1294_v52, %v2531_v0 }
 0x23a   :  { %v880_v17 = vpop.permute.xlu1 %879 }
 0x23b   :  { %v860_v56 = vpop.permute.xlu0 %859  ;;  %v941_v51 = vmul.f32 %v1298_v55, %v880_v17 }
 0x23c   :  { %v937_v29 = vmul.f32 %v1290_v37, %v860_v56  ;;  %v1315_v56 = vunpack.c.h.bf16 %v1339_v21 }
 0x23f   :  { %v2533_v7 = vpop.permute.xlu2 %874 }
 0x240   :  { %v1088_v58 = vpop.f32.mrf.mxu3 }
 0x242   :  { %v1078_v16 = vpop.f32.mrf.mxu2 }
 0x246   :  { %v1058_v26 = vpop.f32.mrf.mxu0 }
 0x247   :  { %v885_v6 = vpop.permute.xlu2 %884  ;;  %v1059_v22 = vadd.f32 %v1058_v26, %v937_v29  ;;  %v1303_v26 = vunpack.c.h.bf16 %v1336_v5 }
 0x248   :  { %v1090_v30 = vpop.f32.mrf.mxu3  ;;  %v942_v28 = vmul.f32 %v1299_v35, %v885_v6 }
 0x249   :  { %1098 = vst [vmem:[#allocation12] sm:$0xff] %v1059_v22 }
 0x24a   :  { %v1080_v11 = vpop.f32.mrf.mxu2 }
 0x24e   :  { %v890_v49 = vpop.permute.xlu1 %889  ;;  %v1060_v39 = vpop.f32.mrf.mxu0 }
 0x24f   :  { %v900_v48 = vpop.permute.xlu2 %899  ;;  %v1068_v46 = vpop.f32.mrf.mxu1  ;;  %v1061_v4 = vadd.f32 %v1060_v39, %v938_v18  ;;  %v943_v27 = vmul.f32 %v1302_v40, %v890_v49 }
 0x250   :  { %v945_v24 = vmul.f32 %v1306_v2, %v900_v48  ;;  %v1069_v8 = vadd.f32 %v1068_v46, %v941_v51 }
 0x251   :  { %1099 = vst [vmem:[#allocation12 + $0x8] sm:$0xff] %v1061_v4 }
 0x252   :  { %v1079_v3 = vadd.f32 %v1078_v16, %v945_v24  ;;  %1102 = vst [vmem:[#allocation12 + $0x20] sm:$0xff] %v1069_v8 }
 0x253   :  { %v895_v45 = vpop.permute.xlu0 %894  ;;  %v1083_v50 = vpop.f32.mrf.mxu2 }
 0x254   :  { %1106 = vst [vmem:[#allocation12 + $0x40] sm:$0xff] %v1079_v3  ;;  %v944_v49 = vmul.f32 %v1303_v26, %v895_v45 }
 0x256   :  { %v905_v32 = vpop.permute.xlu1 %904 }
 0x257   :  { %v946_v12 = vmul.f32 %v1307_v31, %v905_v32  ;;  %v915_v14 = vpop.permute.xlu2 %914  ;;  %v1070_v63 = vpop.f32.mrf.mxu1 }
 0x258   :  { %v1071_v38 = vadd.f32 %v1070_v63, %v942_v28  ;;  %v948_v44 = vmul.f32 %v1311_v61, %v915_v14 }
 0x259   :  { %v1081_v59 = vadd.f32 %v1080_v11, %v946_v12  ;;  %v940_v11 = vmul.f32 %v1295_v9, %v2533_v7 }
 0x25a   :  { %1103 = vst [vmem:[#allocation12 + $0x28] sm:$0xff] %v1071_v38 }
 0x25b   :  { %1107 = vst [vmem:[#allocation12 + $0x48] sm:$0xff] %v1081_v59  ;;  %v910_v41 = vpop.permute.xlu0 %909  ;;  %v1085_v36 = vpop.f32.mrf.mxu2 }
 0x25c   :  { %v947_v54 = vmul.f32 %v1310_v15, %v910_v41  ;;  %v1086_v62 = vadd.f32 %v1085_v36, %v948_v44 }
 0x25d   :  { %v1093_v13 = vpop.f32.mrf.mxu3 }
 0x25e   :  { %v920_v1 = vpop.permute.xlu1 %919  ;;  %v1084_v43 = vadd.f32 %v1083_v50, %v947_v54  ;;  %1109 = vst [vmem:[#allocation12 + $0x58] sm:$0xff] %v1086_v62 }
 0x25f   :  { %v949_v42 = vmul.f32 %v1314_v34, %v920_v1  ;;  %v930_v23 = vpop.permute.xlu2 %929  ;;  %v1063_v33 = vpop.f32.mrf.mxu0 }
 0x260   :  { %1108 = vst [vmem:[#allocation12 + $0x50] sm:$0xff] %v1084_v43  ;;  %v951_v19 = vmul.f32 %v1318_v60, %v930_v23  ;;  %v1073_v37 = vpop.f32.mrf.mxu1  ;;  %v1064_v17 = vadd.f32 %v1063_v33, %v939_v57 }
 0x261   :  { %v1089_v16 = vadd.f32 %v1088_v58, %v949_v42  ;;  %v1074_v29 = vadd.f32 %v1073_v37, %v943_v27 }
 0x262   :  { %v1094_v6 = vadd.f32 %v1093_v13, %v951_v19  ;;  %1100 = vst [vmem:[#allocation12 + $0x10] sm:$0xff] %v1064_v17 }
 0x263   :  { %1110 = vst [vmem:[#allocation12 + $0x60] sm:$0xff] %v1089_v16  ;;  %v925_v22 = vpop.permute.xlu0 %924 }
 0x264   :  { %1112 = vst [vmem:[#allocation12 + $0x70] sm:$0xff] %v1094_v6  ;;  %v950_v0 = vmul.f32 %v1315_v56, %v925_v22 }
 0x265   :  { %1104 = vst [vmem:[#allocation12 + $0x30] sm:$0xff] %v1074_v29  ;;  %v1095_v2 = vpop.f32.mrf.mxu3 }
 0x266   :  { %v935_v55 = vpop.permute.xlu1 %934  ;;  %v1091_v47 = vadd.f32 %v1090_v30, %v950_v0 }
 0x267   :  { %v952_v58 = vmul.f32 %v1319_v25, %v935_v55  ;;  %v1065_v51 = vpop.f32.mrf.mxu0 }
 0x268   :  { %1111 = vst [vmem:[#allocation12 + $0x68] sm:$0xff] %v1091_v47  ;;  %v1075_v48 = vpop.f32.mrf.mxu1  ;;  %v1066_v24 = vadd.f32 %v1065_v51, %v940_v11 }
 0x269   :  { %v1096_v18 = vadd.f32 %v1095_v2, %v952_v58  ;;  %v1076_v46 = vadd.f32 %v1075_v48, %v944_v49 }
 0x26a   :  { %1101 = vst [vmem:[#allocation12 + $0x18] sm:$0xff] %v1066_v24 }
 0x26b   :  { %1113 = vst [vmem:[#allocation12 + $0x78] sm:$0xff] %v1096_v18 }
 0x26c   :  { %1105 = vst [vmem:[#allocation12 + $0x38] sm:$0xff] %v1076_v46 }
 0x26d   :  { %1126 = dma.vmem_to_hbm [thread:$0]  %s1119_s13, 2048, %s1121_s16, [#allocation8], %s1608_s26, %s1608_s26, %s1609_s27  }
 0x26e   :  { %1605 = dma.done.wait [#allocation8], 2048  }
 0x26f   :  { %1606 = vsyncadd [#allocation8], 4294965248 }
 0x270   :  { %1131 = vsyncpa [#allocation7], 1 }
 0x271   :  { %1132 = vsyncpa [#allocation10], 1 }
 0x272   :  { %1133 = vsyncpa [#allocation8], 1 }

</bundles_post_ra>
